<compile_context>
chip_gen: v7x
topology: tpu7x:2x2x1
jax: 0.10.0
libtpu: 0.0.40
codegen_flags: <defaults>
</compile_context>

<pallas_src>
import functools

import jax
import jax.numpy as jnp
from jax.experimental import pallas as pl
from jax.experimental.pallas import tpu as pltpu


def _make_fused_kernel(taps, m0, L, C, n_valid, eps=1e-5):
    """Fused: Gaussian score -> im2col scratch -> conv(2C->C) -> BN -> ReLU."""
    C2 = 2 * C
    inv_n = 1.0 / float(n_valid)

    def kernel(ksum_ref, f_ref, mask_ref, w_ref, gamma_ref, beta_ref,
               out_ref, sc_scr, x9_scr):
        # ---- grid step 0: build score + im2col matrix once (stays resident)
        @pl.when(pl.program_id(0) == 0)
        def _():
            f_all = f_ref[...]                              # (C, Lfull)
            mask = mask_ref[...]                            # (1, L)
            # depthwise 3x3 conv with the summed Gaussian kernel (VPU FMAs)
            acc = jnp.zeros((C, L), jnp.float32)
            for t, off in enumerate(taps):                  # 9 taps, unrolled
                a = m0 + off
                acc = acc + ksum_ref[t] * f_all[:, a:a + L]
            # score must be zero outside the real HxW area (these are exactly
            # the pad-1 zeros the second conv reads around the score)
            sc_scr[...] = jnp.zeros(sc_scr.shape, sc_scr.dtype)
            sc_scr[:, m0:m0 + L] = acc * mask
            # im2col: row (t*2C + cin) = input channel cin shifted by tap t.
            # Channels [0, C) = score, [C, 2C) = f  (the torch concat order).
            for t, off in enumerate(taps):
                a = m0 + off
                x9_scr[t * C2:t * C2 + C, :] = sc_scr[:, a:a + L]
                x9_scr[t * C2 + C:(t + 1) * C2, :] = f_all[:, a:a + L]

        # ---- every step: one MXU matmul + BN + ReLU for this co block -----
        wv = w_ref[...][:, 0, :]                            # (cbo, 9*2C)
        y = jnp.dot(wv, x9_scr[...],                        # (cbo, L)
                    preferred_element_type=jnp.float32)
        # NOTE: the Conv2d bias is intentionally omitted here: train-mode
        # BatchNorm subtracts the per-channel mean, which cancels it exactly.
        m = mask_ref[...]                                   # (1, L)
        ym = y * m
        s1 = jnp.sum(ym, axis=1, keepdims=True)             # one-pass BN stats
        s2 = jnp.sum(ym * ym, axis=1, keepdims=True)
        mean = s1 * inv_n
        var = s2 * inv_n - mean * mean
        inv_std = jax.lax.rsqrt(var + eps)
        g = gamma_ref[...][:, 0, :]                         # (cbo, 1)
        b = beta_ref[...][:, 0, :]
        yn = (y - mean) * (inv_std * g) + b
        out_ref[...] = jnp.maximum(yn, 0.0)[:, None, :]

    return kernel


@functools.partial(jax.jit, static_argnames=("co_block",))
def gaussian_conv2d2(f, atten_w, conv_w, conv_b, bn_gamma, bn_beta,
                     *, co_block=None):
    """f: (B, C, H, W) float32 NCHW. Returns (B, C, H, W) float32."""
    del conv_b  # exactly cancelled by train-mode BatchNorm mean subtraction
    # TODO(synk): BatchNorm running_mean/running_var buffer updates (training
    # side effect) are not modeled; only the forward output is reproduced.
    B, C, H, W = f.shape
    C2 = 2 * C
    Hp, Wp = H + 4, W + 4                 # pad-2 geometry
    P = Hp * Wp
    Lfull = B * P                         # flat (lane) extent per channel
    m0 = Wp + 1                           # largest |flat tap offset|
    L = Lfull - 2 * m0                    # computed window length
    n_valid = B * H * W

    # Output-channel block size (grid extent = C // co_block).
    if co_block is None:
        co_block = C if C <= 8 else 8
    assert C % co_block == 0

    f32 = jnp.float32
    # pad-2, channel-major, batch folded into the flat lane axis
    f_pad = jnp.pad(f.astype(f32), ((0, 0), (0, 0), (2, 2), (2, 2)))
    f_flat = f_pad.transpose(1, 0, 2, 3).reshape(C, Lfull)

    # sum of the 9 Gaussian kernels (conv is linear; channel-sum == kernel-sum)
    ksum = jnp.sum(atten_w[:, 0], axis=0).reshape(9).astype(f32)

    # 1.0 at real image pixels inside the [m0, m0+L) window, 0 elsewhere
    mask2d = jnp.zeros((Hp, Wp), f32).at[2:2 + H, 2:2 + W].set(1.0)
    mask = jnp.tile(mask2d.reshape(-1), (B,))[m0:m0 + L].reshape(1, L)

    # flat offsets of the 3x3 taps (kh-major, matching torch weight layout)
    taps = tuple((dy - 1) * Wp + (dx - 1)
                 for dy in range(3) for dx in range(3))

    # conv weights as (C, 1, 9*2C): column index = (kh*3+kw)*2C + cin
    w_mat = conv_w.astype(f32).transpose(0, 2, 3, 1).reshape(C, 1, 9 * C2)
    gamma = bn_gamma.astype(f32).reshape(C, 1, 1)
    beta = bn_beta.astype(f32).reshape(C, 1, 1)

    y = pl.pallas_call(
        _make_fused_kernel(taps, m0, L, C, n_valid),
        out_shape=jax.ShapeDtypeStruct((C, 1, L), f32),
        grid=(C // co_block,),
        in_specs=[
            pl.BlockSpec(memory_space=pltpu.MemorySpace.SMEM),          # ksum
            pl.BlockSpec((C, Lfull), lambda i: (0, 0)),                 # f
            pl.BlockSpec((1, L), lambda i: (0, 0)),                     # mask
            pl.BlockSpec((co_block, 1, 9 * C2), lambda i: (i, 0, 0)),   # w
            pl.BlockSpec((co_block, 1, 1), lambda i: (i, 0, 0)),        # gamma
            pl.BlockSpec((co_block, 1, 1), lambda i: (i, 0, 0)),        # beta
        ],
        out_specs=pl.BlockSpec((co_block, 1, L), lambda i: (i, 0, 0)),
        scratch_shapes=[
            pltpu.VMEM((C, Lfull), f32),          # zero-extended score
            pltpu.VMEM((9 * C2, L), f32),         # resident im2col matrix
        ],
        compiler_params=pltpu.CompilerParams(
            dimension_semantics=("arbitrary",),   # step-0 scratch dependency
            vmem_limit_bytes=32 * 1024 * 1024),
    )(ksum, f_flat, mask, w_mat, gamma, beta)

    # un-flatten: window -> pad-2 grid -> interior -> NCHW (layout plumbing)
    y_full = jnp.pad(y[:, 0, :], ((0, 0), (m0, m0)))             # (C, Lfull)
    out = y_full.reshape(C, B, Hp, Wp)[:, :, 2:2 + H, 2:2 + W]
    return out.transpose(1, 0, 2, 3)


def build_params(in_channel, key, kernel_size=3, sigma_init=0.6):
    """Deterministic parameters mirroring GaussianConv2d2.__init__ and
    __set_kernel__ (synthetic weights, no checkpoint)."""
    k1, k2, k3 = jax.random.split(key, 3)
    sigma = jnp.ones((kernel_size, kernel_size), jnp.float32) * sigma_init
    gbias = jax.random.normal(k1, (kernel_size, kernel_size),
                              dtype=jnp.float32) - 0.1
    kernels = []
    for i in range(kernel_size):
        for j in range(kernel_size):
            x = jnp.arange(kernel_size, dtype=jnp.float32) - i
            y = jnp.arange(kernel_size, dtype=jnp.float32) - j
            kx = jnp.exp(-x ** 2 / (2.0 * sigma[i, j] ** 2))
            ky = jnp.exp(-y ** 2 / (2.0 * sigma[i, j] ** 2))
            k2d = jnp.outer(kx, ky)
            k2d = k2d / jnp.sum(k2d)
            k2d = k2d - gbias[i, j]
            kernels.append(k2d)
    atten_w = jnp.stack(kernels, axis=0)[:, None, :, :]   # (9, 1, 3, 3)

    C = in_channel
    conv_w = 0.1 * jax.random.normal(k2, (C, 2 * C, 3, 3), dtype=jnp.float32)
    conv_b = 0.05 * jax.random.normal(k3, (C,), dtype=jnp.float32)
    bn_gamma = jnp.ones((C,), jnp.float32)                 # PyTorch BN init
    bn_beta = jnp.zeros((C,), jnp.float32)
    return atten_w, conv_w, conv_b, bn_gamma, bn_beta


def gaussian_conv2d2_reference(f, atten_w, conv_w, conv_b, bn_gamma, bn_beta):
    """Pure-JAX reference mirroring the PyTorch forward (train-mode BN)."""
    B, C, H, W = f.shape
    dn = ('NCHW', 'OIHW', 'NCHW')
    hi = jax.lax.Precision.HIGHEST
    fv = f.reshape(B * C, 1, H, W)
    score = jax.lax.conv_general_dilated(fv, atten_w, (1, 1), ((1, 1), (1, 1)),
                                         dimension_numbers=dn, precision=hi)
    score = jnp.sum(score, axis=1, keepdims=True).reshape(B, C, H, W)
    x = jnp.concatenate([score, f], axis=1)                 # (B, 2C, H, W)
    y = jax.lax.conv_general_dilated(x, conv_w, (1, 1), ((1, 1), (1, 1)),
                                     dimension_numbers=dn, precision=hi)
    y = y + conv_b.reshape(1, C, 1, 1)
    mean = jnp.mean(y, axis=(0, 2, 3), keepdims=True)
    var = jnp.mean((y - mean) ** 2, axis=(0, 2, 3), keepdims=True)
    y = (y - mean) * jax.lax.rsqrt(var + 1e-5) * bn_gamma.reshape(1, C, 1, 1) \
        + bn_beta.reshape(1, C, 1, 1)
    return jnp.maximum(y, 0.0)


if __name__ == "__main__":
    key = jax.random.PRNGKey(0)
    k_data, k_param = jax.random.split(key)

    B, C, H, W = 2, 4, 16, 16
    f = jax.random.normal(k_data, (B, C, H, W), dtype=jnp.float32)
    atten_w, conv_w, conv_b, bn_gamma, bn_beta = build_params(C, k_param)

    out = gaussian_conv2d2(f, atten_w, conv_w, conv_b, bn_gamma, bn_beta)
    out = jax.block_until_ready(out)

    ref = gaussian_conv2d2_reference(f, atten_w, conv_w, conv_b,
                                     bn_gamma, bn_beta)
    assert out.shape == (B, C, H, W)
    max_err = float(jnp.max(jnp.abs(out - ref)))
    assert max_err < 1e-3, f"mismatch vs reference: {max_err}"
    print("KERNEL_OK")
</pallas_src>

<mosaic_0001>
module attributes {stable_mosaic.version = 11 : i64} {
  func.func @kernel(%arg0: i32, %arg1: memref<9xf32, #tpu.memory_space<smem>>, %arg2: memref<4x800xf32, #tpu.memory_space<vmem>>, %arg3: memref<1x758xf32, #tpu.memory_space<vmem>>, %arg4: memref<4x1x72xf32, #tpu.memory_space<vmem>>, %arg5: memref<4x1x1xf32, #tpu.memory_space<vmem>>, %arg6: memref<4x1x1xf32, #tpu.memory_space<vmem>>, %arg7: memref<4x1x758xf32, #tpu.memory_space<vmem>>, %arg8: memref<4x800xf32, #tpu.memory_space<vmem>>, %arg9: memref<72x758xf32, #tpu.memory_space<vmem>>) attributes {dimension_semantics = [#tpu.dimension_semantics<arbitrary>], iteration_bounds = array<i64: 1>, scalar_prefetch = 0 : i64, scratch_operands = 2 : i64, tpu.core_type = #tpu.core_type<tc>, window_params = [{transform_indices = @transform_0, window_bounds = array<i64: 9>}, {pipeline_mode = #tpu.pipeline_mode<synchronous>, transform_indices = @transform_1, window_bounds = array<i64: 4, 800>}, {pipeline_mode = #tpu.pipeline_mode<synchronous>, transform_indices = @transform_2, window_bounds = array<i64: 1, 758>}, {transform_indices = @transform_3, window_bounds = array<i64: 4, 1, 72>}, {transform_indices = @transform_4, window_bounds = array<i64: 4, 1, 1>}, {transform_indices = @transform_5, window_bounds = array<i64: 4, 1, 1>}, {transform_indices = @transform_6, window_bounds = array<i64: 4, 1, 758>}]} {
    %c0_i32 = arith.constant 0 : i32
    %0 = arith.cmpi eq, %arg0, %c0_i32 : i32
    %1 = arith.extui %0 : i1 to i32
    %c0_i32_0 = arith.constant 0 : i32
    %2 = arith.cmpi ne, %1, %c0_i32_0 : i32
    scf.if %2 {
      %c0_22 = arith.constant 0 : index
      %c0_23 = arith.constant 0 : index
      %39 = vector.load %arg2[%c0_22, %c0_23] : memref<4x800xf32, #tpu.memory_space<vmem>>, vector<4x800xf32>
      %c0_24 = arith.constant 0 : index
      %c0_25 = arith.constant 0 : index
      %40 = vector.load %arg3[%c0_24, %c0_25] : memref<1x758xf32, #tpu.memory_space<vmem>>, vector<1x758xf32>
      %cst_26 = arith.constant 0.000000e+00 : f32
      %41 = vector.broadcast %cst_26 : f32 to vector<4x758xf32>
      %c0_27 = arith.constant 0 : index
      %42 = memref.load %arg1[%c0_27] : memref<9xf32, #tpu.memory_space<smem>>
      %43 = vector.extract_strided_slice %39 {offsets = [0, 0], sizes = [4, 758], strides = [1, 1]} : vector<4x800xf32> to vector<4x758xf32>
      %44 = vector.broadcast %42 : f32 to vector<4x758xf32>
      %45 = arith.mulf %44, %43 : vector<4x758xf32>
      %46 = arith.addf %41, %45 : vector<4x758xf32>
      %c1 = arith.constant 1 : index
      %47 = memref.load %arg1[%c1] : memref<9xf32, #tpu.memory_space<smem>>
      %48 = vector.extract_strided_slice %39 {offsets = [0, 1], sizes = [4, 758], strides = [1, 1]} : vector<4x800xf32> to vector<4x758xf32>
      %49 = vector.broadcast %47 : f32 to vector<4x758xf32>
      %50 = arith.mulf %49, %48 : vector<4x758xf32>
      %51 = arith.addf %46, %50 : vector<4x758xf32>
      %c2 = arith.constant 2 : index
      %52 = memref.load %arg1[%c2] : memref<9xf32, #tpu.memory_space<smem>>
      %53 = vector.extract_strided_slice %39 {offsets = [0, 2], sizes = [4, 758], strides = [1, 1]} : vector<4x800xf32> to vector<4x758xf32>
      %54 = vector.broadcast %52 : f32 to vector<4x758xf32>
      %55 = arith.mulf %54, %53 : vector<4x758xf32>
      %56 = arith.addf %51, %55 : vector<4x758xf32>
      %c3 = arith.constant 3 : index
      %57 = memref.load %arg1[%c3] : memref<9xf32, #tpu.memory_space<smem>>
      %58 = vector.extract_strided_slice %39 {offsets = [0, 20], sizes = [4, 758], strides = [1, 1]} : vector<4x800xf32> to vector<4x758xf32>
      %59 = vector.broadcast %57 : f32 to vector<4x758xf32>
      %60 = arith.mulf %59, %58 : vector<4x758xf32>
      %61 = arith.addf %56, %60 : vector<4x758xf32>
      %c4 = arith.constant 4 : index
      %62 = memref.load %arg1[%c4] : memref<9xf32, #tpu.memory_space<smem>>
      %63 = vector.extract_strided_slice %39 {offsets = [0, 21], sizes = [4, 758], strides = [1, 1]} : vector<4x800xf32> to vector<4x758xf32>
      %64 = vector.broadcast %62 : f32 to vector<4x758xf32>
      %65 = arith.mulf %64, %63 : vector<4x758xf32>
      %66 = arith.addf %61, %65 : vector<4x758xf32>
      %c5 = arith.constant 5 : index
      %67 = memref.load %arg1[%c5] : memref<9xf32, #tpu.memory_space<smem>>
      %68 = vector.extract_strided_slice %39 {offsets = [0, 22], sizes = [4, 758], strides = [1, 1]} : vector<4x800xf32> to vector<4x758xf32>
      %69 = vector.broadcast %67 : f32 to vector<4x758xf32>
      %70 = arith.mulf %69, %68 : vector<4x758xf32>
      %71 = arith.addf %66, %70 : vector<4x758xf32>
      %c6 = arith.constant 6 : index
      %72 = memref.load %arg1[%c6] : memref<9xf32, #tpu.memory_space<smem>>
      %73 = vector.extract_strided_slice %39 {offsets = [0, 40], sizes = [4, 758], strides = [1, 1]} : vector<4x800xf32> to vector<4x758xf32>
      %74 = vector.broadcast %72 : f32 to vector<4x758xf32>
      %75 = arith.mulf %74, %73 : vector<4x758xf32>
      %76 = arith.addf %71, %75 : vector<4x758xf32>
      %c7 = arith.constant 7 : index
      %77 = memref.load %arg1[%c7] : memref<9xf32, #tpu.memory_space<smem>>
      %78 = vector.extract_strided_slice %39 {offsets = [0, 41], sizes = [4, 758], strides = [1, 1]} : vector<4x800xf32> to vector<4x758xf32>
      %79 = vector.broadcast %77 : f32 to vector<4x758xf32>
      %80 = arith.mulf %79, %78 : vector<4x758xf32>
      %81 = arith.addf %76, %80 : vector<4x758xf32>
      %c8 = arith.constant 8 : index
      %82 = memref.load %arg1[%c8] : memref<9xf32, #tpu.memory_space<smem>>
      %83 = vector.extract_strided_slice %39 {offsets = [0, 42], sizes = [4, 758], strides = [1, 1]} : vector<4x800xf32> to vector<4x758xf32>
      %84 = vector.broadcast %82 : f32 to vector<4x758xf32>
      %85 = arith.mulf %84, %83 : vector<4x758xf32>
      %86 = arith.addf %81, %85 : vector<4x758xf32>
      %cst_28 = arith.constant 0.000000e+00 : f32
      %87 = vector.broadcast %cst_28 : f32 to vector<4x800xf32>
      %c0_29 = arith.constant 0 : index
      %c0_30 = arith.constant 0 : index
      %88 = vector.load %arg8[%c0_29, %c0_30] : memref<4x800xf32, #tpu.memory_space<vmem>>, vector<4x800xf32>
      tpu.vector_store %arg8[%c0_29, %c0_30], %87 {strides = array<i32>} : memref<4x800xf32, #tpu.memory_space<vmem>>, vector<4x800xf32>,
      %89 = vector.broadcast %40 : vector<1x758xf32> to vector<4x758xf32>
      %90 = arith.mulf %86, %89 : vector<4x758xf32>
      %c0_31 = arith.constant 0 : index
      %c21 = arith.constant 21 : index
      %91 = vector.load %arg8[%c0_31, %c21] : memref<4x800xf32, #tpu.memory_space<vmem>>, vector<4x758xf32>
      tpu.vector_store %arg8[%c0_31, %c21], %90 {strides = array<i32>} : memref<4x800xf32, #tpu.memory_space<vmem>>, vector<4x758xf32>,
      %c0_32 = arith.constant 0 : index
      %c0_33 = arith.constant 0 : index
      %92 = vector.load %arg8[%c0_32, %c0_33] : memref<4x800xf32, #tpu.memory_space<vmem>>, vector<4x758xf32>
      %c0_34 = arith.constant 0 : index
      %c0_35 = arith.constant 0 : index
      %93 = vector.load %arg9[%c0_34, %c0_35] : memref<72x758xf32, #tpu.memory_space<vmem>>, vector<4x758xf32>
      tpu.vector_store %arg9[%c0_34, %c0_35], %92 {strides = array<i32>} : memref<72x758xf32, #tpu.memory_space<vmem>>, vector<4x758xf32>,
      %94 = vector.extract_strided_slice %39 {offsets = [0, 0], sizes = [4, 758], strides = [1, 1]} : vector<4x800xf32> to vector<4x758xf32>
      %c4_36 = arith.constant 4 : index
      %c0_37 = arith.constant 0 : index
      %95 = vector.load %arg9[%c4_36, %c0_37] : memref<72x758xf32, #tpu.memory_space<vmem>>, vector<4x758xf32>
      tpu.vector_store %arg9[%c4_36, %c0_37], %94 {strides = array<i32>} : memref<72x758xf32, #tpu.memory_space<vmem>>, vector<4x758xf32>,
      %c0_38 = arith.constant 0 : index
      %c1_39 = arith.constant 1 : index
      %96 = vector.load %arg8[%c0_38, %c1_39] : memref<4x800xf32, #tpu.memory_space<vmem>>, vector<4x758xf32>
      %c8_40 = arith.constant 8 : index
      %c0_41 = arith.constant 0 : index
      %97 = vector.load %arg9[%c8_40, %c0_41] : memref<72x758xf32, #tpu.memory_space<vmem>>, vector<4x758xf32>
      tpu.vector_store %arg9[%c8_40, %c0_41], %96 {strides = array<i32>} : memref<72x758xf32, #tpu.memory_space<vmem>>, vector<4x758xf32>,
      %98 = vector.extract_strided_slice %39 {offsets = [0, 1], sizes = [4, 758], strides = [1, 1]} : vector<4x800xf32> to vector<4x758xf32>
      %c12 = arith.constant 12 : index
      %c0_42 = arith.constant 0 : index
      %99 = vector.load %arg9[%c12, %c0_42] : memref<72x758xf32, #tpu.memory_space<vmem>>, vector<4x758xf32>
      tpu.vector_store %arg9[%c12, %c0_42], %98 {strides = array<i32>} : memref<72x758xf32, #tpu.memory_space<vmem>>, vector<4x758xf32>,
      %c0_43 = arith.constant 0 : index
      %c2_44 = arith.constant 2 : index
      %100 = vector.load %arg8[%c0_43, %c2_44] : memref<4x800xf32, #tpu.memory_space<vmem>>, vector<4x758xf32>
      %c16 = arith.constant 16 : index
      %c0_45 = arith.constant 0 : index
      %101 = vector.load %arg9[%c16, %c0_45] : memref<72x758xf32, #tpu.memory_space<vmem>>, vector<4x758xf32>
      tpu.vector_store %arg9[%c16, %c0_45], %100 {strides = array<i32>} : memref<72x758xf32, #tpu.memory_space<vmem>>, vector<4x758xf32>,
      %102 = vector.extract_strided_slice %39 {offsets = [0, 2], sizes = [4, 758], strides = [1, 1]} : vector<4x800xf32> to vector<4x758xf32>
      %c20 = arith.constant 20 : index
      %c0_46 = arith.constant 0 : index
      %103 = vector.load %arg9[%c20, %c0_46] : memref<72x758xf32, #tpu.memory_space<vmem>>, vector<4x758xf32>
      tpu.vector_store %arg9[%c20, %c0_46], %102 {strides = array<i32>} : memref<72x758xf32, #tpu.memory_space<vmem>>, vector<4x758xf32>,
      %c0_47 = arith.constant 0 : index
      %c20_48 = arith.constant 20 : index
      %104 = vector.load %arg8[%c0_47, %c20_48] : memref<4x800xf32, #tpu.memory_space<vmem>>, vector<4x758xf32>
      %c24 = arith.constant 24 : index
      %c0_49 = arith.constant 0 : index
      %105 = vector.load %arg9[%c24, %c0_49] : memref<72x758xf32, #tpu.memory_space<vmem>>, vector<4x758xf32>
      tpu.vector_store %arg9[%c24, %c0_49], %104 {strides = array<i32>} : memref<72x758xf32, #tpu.memory_space<vmem>>, vector<4x758xf32>,
      %106 = vector.extract_strided_slice %39 {offsets = [0, 20], sizes = [4, 758], strides = [1, 1]} : vector<4x800xf32> to vector<4x758xf32>
      %c28 = arith.constant 28 : index
      %c0_50 = arith.constant 0 : index
      %107 = vector.load %arg9[%c28, %c0_50] : memref<72x758xf32, #tpu.memory_space<vmem>>, vector<4x758xf32>
      tpu.vector_store %arg9[%c28, %c0_50], %106 {strides = array<i32>} : memref<72x758xf32, #tpu.memory_space<vmem>>, vector<4x758xf32>,
      %c0_51 = arith.constant 0 : index
      %c21_52 = arith.constant 21 : index
      %108 = vector.load %arg8[%c0_51, %c21_52] : memref<4x800xf32, #tpu.memory_space<vmem>>, vector<4x758xf32>
      %c32 = arith.constant 32 : index
      %c0_53 = arith.constant 0 : index
      %109 = vector.load %arg9[%c32, %c0_53] : memref<72x758xf32, #tpu.memory_space<vmem>>, vector<4x758xf32>
      tpu.vector_store %arg9[%c32, %c0_53], %108 {strides = array<i32>} : memref<72x758xf32, #tpu.memory_space<vmem>>, vector<4x758xf32>,
      %110 = vector.extract_strided_slice %39 {offsets = [0, 21], sizes = [4, 758], strides = [1, 1]} : vector<4x800xf32> to vector<4x758xf32>
      %c36 = arith.constant 36 : index
      %c0_54 = arith.constant 0 : index
      %111 = vector.load %arg9[%c36, %c0_54] : memref<72x758xf32, #tpu.memory_space<vmem>>, vector<4x758xf32>
      tpu.vector_store %arg9[%c36, %c0_54], %110 {strides = array<i32>} : memref<72x758xf32, #tpu.memory_space<vmem>>, vector<4x758xf32>,
      %c0_55 = arith.constant 0 : index
      %c22 = arith.constant 22 : index
      %112 = vector.load %arg8[%c0_55, %c22] : memref<4x800xf32, #tpu.memory_space<vmem>>, vector<4x758xf32>
      %c40 = arith.constant 40 : index
      %c0_56 = arith.constant 0 : index
      %113 = vector.load %arg9[%c40, %c0_56] : memref<72x758xf32, #tpu.memory_space<vmem>>, vector<4x758xf32>
      tpu.vector_store %arg9[%c40, %c0_56], %112 {strides = array<i32>} : memref<72x758xf32, #tpu.memory_space<vmem>>, vector<4x758xf32>,
      %114 = vector.extract_strided_slice %39 {offsets = [0, 22], sizes = [4, 758], strides = [1, 1]} : vector<4x800xf32> to vector<4x758xf32>
      %c44 = arith.constant 44 : index
      %c0_57 = arith.constant 0 : index
      %115 = vector.load %arg9[%c44, %c0_57] : memref<72x758xf32, #tpu.memory_space<vmem>>, vector<4x758xf32>
      tpu.vector_store %arg9[%c44, %c0_57], %114 {strides = array<i32>} : memref<72x758xf32, #tpu.memory_space<vmem>>, vector<4x758xf32>,
      %c0_58 = arith.constant 0 : index
      %c40_59 = arith.constant 40 : index
      %116 = vector.load %arg8[%c0_58, %c40_59] : memref<4x800xf32, #tpu.memory_space<vmem>>, vector<4x758xf32>
      %c48 = arith.constant 48 : index
      %c0_60 = arith.constant 0 : index
      %117 = vector.load %arg9[%c48, %c0_60] : memref<72x758xf32, #tpu.memory_space<vmem>>, vector<4x758xf32>
      tpu.vector_store %arg9[%c48, %c0_60], %116 {strides = array<i32>} : memref<72x758xf32, #tpu.memory_space<vmem>>, vector<4x758xf32>,
      %118 = vector.extract_strided_slice %39 {offsets = [0, 40], sizes = [4, 758], strides = [1, 1]} : vector<4x800xf32> to vector<4x758xf32>
      %c52 = arith.constant 52 : index
      %c0_61 = arith.constant 0 : index
      %119 = vector.load %arg9[%c52, %c0_61] : memref<72x758xf32, #tpu.memory_space<vmem>>, vector<4x758xf32>
      tpu.vector_store %arg9[%c52, %c0_61], %118 {strides = array<i32>} : memref<72x758xf32, #tpu.memory_space<vmem>>, vector<4x758xf32>,
      %c0_62 = arith.constant 0 : index
      %c41 = arith.constant 41 : index
      %120 = vector.load %arg8[%c0_62, %c41] : memref<4x800xf32, #tpu.memory_space<vmem>>, vector<4x758xf32>
      %c56 = arith.constant 56 : index
      %c0_63 = arith.constant 0 : index
      %121 = vector.load %arg9[%c56, %c0_63] : memref<72x758xf32, #tpu.memory_space<vmem>>, vector<4x758xf32>
      tpu.vector_store %arg9[%c56, %c0_63], %120 {strides = array<i32>} : memref<72x758xf32, #tpu.memory_space<vmem>>, vector<4x758xf32>,
      %122 = vector.extract_strided_slice %39 {offsets = [0, 41], sizes = [4, 758], strides = [1, 1]} : vector<4x800xf32> to vector<4x758xf32>
      %c60 = arith.constant 60 : index
      %c0_64 = arith.constant 0 : index
      %123 = vector.load %arg9[%c60, %c0_64] : memref<72x758xf32, #tpu.memory_space<vmem>>, vector<4x758xf32>
      tpu.vector_store %arg9[%c60, %c0_64], %122 {strides = array<i32>} : memref<72x758xf32, #tpu.memory_space<vmem>>, vector<4x758xf32>,
      %c0_65 = arith.constant 0 : index
      %c42 = arith.constant 42 : index
      %124 = vector.load %arg8[%c0_65, %c42] : memref<4x800xf32, #tpu.memory_space<vmem>>, vector<4x758xf32>
      %c64 = arith.constant 64 : index
      %c0_66 = arith.constant 0 : index
      %125 = vector.load %arg9[%c64, %c0_66] : memref<72x758xf32, #tpu.memory_space<vmem>>, vector<4x758xf32>
      tpu.vector_store %arg9[%c64, %c0_66], %124 {strides = array<i32>} : memref<72x758xf32, #tpu.memory_space<vmem>>, vector<4x758xf32>,
      %126 = vector.extract_strided_slice %39 {offsets = [0, 42], sizes = [4, 758], strides = [1, 1]} : vector<4x800xf32> to vector<4x758xf32>
      %c68 = arith.constant 68 : index
      %c0_67 = arith.constant 0 : index
      %127 = vector.load %arg9[%c68, %c0_67] : memref<72x758xf32, #tpu.memory_space<vmem>>, vector<4x758xf32>
      tpu.vector_store %arg9[%c68, %c0_67], %126 {strides = array<i32>} : memref<72x758xf32, #tpu.memory_space<vmem>>, vector<4x758xf32>,
    } else {
    }
    %c0 = arith.constant 0 : index
    %c0_1 = arith.constant 0 : index
    %c0_2 = arith.constant 0 : index
    %3 = vector.load %arg4[%c0, %c0_1, %c0_2] : memref<4x1x72xf32, #tpu.memory_space<vmem>>, vector<4x1x72xf32>
    %4 = vector.shape_cast %3 : vector<4x1x72xf32> to vector<4x72xf32>
    %c0_3 = arith.constant 0 : index
    %c0_4 = arith.constant 0 : index
    %5 = vector.load %arg9[%c0_3, %c0_4] : memref<72x758xf32, #tpu.memory_space<vmem>>, vector<72x758xf32>
    %cst = arith.constant dense<0.000000e+00> : vector<4x758xf32>
    %6 = tpu.matmul %4, %5, %cst {dimension_numbers = #tpu.dot_dimension_numbers<[1], [0], [0], [1], [0, 0, 1, 1], [], []>} : vector<4x72xf32>, vector<72x758xf32>, vector<4x758xf32> -> vector<4x758xf32>
    %c0_5 = arith.constant 0 : index
    %c0_6 = arith.constant 0 : index
    %7 = vector.load %arg3[%c0_5, %c0_6] : memref<1x758xf32, #tpu.memory_space<vmem>>, vector<1x758xf32>
    %8 = vector.broadcast %7 : vector<1x758xf32> to vector<4x758xf32>
    %9 = arith.mulf %6, %8 : vector<4x758xf32>
    %cst_7 = arith.constant dense<0.000000e+00> : vector<4xf32>
    %10 = vector.multi_reduction <add>, %9, %cst_7 [1] : vector<4x758xf32> to vector<4xf32>
    %11 = vector.shape_cast %10 : vector<4xf32> to vector<4x1xf32>
    %12 = arith.mulf %9, %9 : vector<4x758xf32>
    %cst_8 = arith.constant dense<0.000000e+00> : vector<4xf32>
    %13 = vector.multi_reduction <add>, %12, %cst_8 [1] : vector<4x758xf32> to vector<4xf32>
    %14 = vector.shape_cast %13 : vector<4xf32> to vector<4x1xf32>
    %cst_9 = arith.constant 0.001953125 : f32
    %15 = vector.broadcast %cst_9 : f32 to vector<4x1xf32>
    %16 = arith.mulf %11, %15 : vector<4x1xf32>
    %cst_10 = arith.constant 0.001953125 : f32
    %17 = vector.broadcast %cst_10 : f32 to vector<4x1xf32>
    %18 = arith.mulf %14, %17 : vector<4x1xf32>
    %19 = arith.mulf %16, %16 : vector<4x1xf32>
    %20 = arith.subf %18, %19 : vector<4x1xf32>
    %cst_11 = arith.constant 9.99999974E-6 : f32
    %21 = vector.broadcast %cst_11 : f32 to vector<4x1xf32>
    %22 = arith.addf %20, %21 : vector<4x1xf32>
    %23 = math.rsqrt %22 : vector<4x1xf32>
    %c0_12 = arith.constant 0 : index
    %c0_13 = arith.constant 0 : index
    %c0_14 = arith.constant 0 : index
    %24 = vector.load %arg5[%c0_12, %c0_13, %c0_14] : memref<4x1x1xf32, #tpu.memory_space<vmem>>, vector<4x1x1xf32>
    %25 = vector.shape_cast %24 : vector<4x1x1xf32> to vector<4x1xf32>
    %c0_15 = arith.constant 0 : index
    %c0_16 = arith.constant 0 : index
    %c0_17 = arith.constant 0 : index
    %26 = vector.load %arg6[%c0_15, %c0_16, %c0_17] : memref<4x1x1xf32, #tpu.memory_space<vmem>>, vector<4x1x1xf32>
    %27 = vector.shape_cast %26 : vector<4x1x1xf32> to vector<4x1xf32>
    %28 = vector.broadcast %16 : vector<4x1xf32> to vector<4x758xf32>
    %29 = arith.subf %6, %28 : vector<4x758xf32>
    %30 = arith.mulf %23, %25 : vector<4x1xf32>
    %31 = vector.broadcast %30 : vector<4x1xf32> to vector<4x758xf32>
    %32 = arith.mulf %29, %31 : vector<4x758xf32>
    %33 = vector.broadcast %27 : vector<4x1xf32> to vector<4x758xf32>
    %34 = arith.addf %32, %33 : vector<4x758xf32>
    %cst_18 = arith.constant 0.000000e+00 : f32
    %35 = vector.broadcast %cst_18 : f32 to vector<4x758xf32>
    %36 = arith.maximumf %34, %35 : vector<4x758xf32>
    %37 = vector.shape_cast %36 : vector<4x758xf32> to vector<4x1x758xf32>
    %c0_19 = arith.constant 0 : index
    %c0_20 = arith.constant 0 : index
    %c0_21 = arith.constant 0 : index
    %38 = vector.load %arg7[%c0_19, %c0_20, %c0_21] : memref<4x1x758xf32, #tpu.memory_space<vmem>>, vector<4x1x758xf32>
    tpu.vector_store %arg7[%c0_19, %c0_20, %c0_21], %37 {strides = array<i32>} : memref<4x1x758xf32, #tpu.memory_space<vmem>>, vector<4x1x758xf32>,
    return
  }
  func.func @transform_0(%arg0: i32) -> i32 {
    %c0_i32 = arith.constant 0 : i32
    %c0_i32_0 = arith.constant 0 : i32
    return %c0_i32 : i32
  }
  func.func @transform_1(%arg0: i32) -> (i32, i32) {
    %c0_i32 = arith.constant 0 : i32
    %c0_i32_0 = arith.constant 0 : i32
    %c0_i32_1 = arith.constant 0 : i32
    return %c0_i32, %c0_i32_0 : i32, i32
  }
  func.func @transform_2(%arg0: i32) -> (i32, i32) {
    %c0_i32 = arith.constant 0 : i32
    %c0_i32_0 = arith.constant 0 : i32
    %c0_i32_1 = arith.constant 0 : i32
    return %c0_i32, %c0_i32_0 : i32, i32
  }
  func.func @transform_3(%arg0: i32) -> (i32, i32, i32) {
    %c0_i32 = arith.constant 0 : i32
    %c0_i32_0 = arith.constant 0 : i32
    %c0_i32_1 = arith.constant 0 : i32
    return %arg0, %c0_i32, %c0_i32_0 : i32, i32, i32
  }
  func.func @transform_4(%arg0: i32) -> (i32, i32, i32) {
    %c0_i32 = arith.constant 0 : i32
    %c0_i32_0 = arith.constant 0 : i32
    %c0_i32_1 = arith.constant 0 : i32
    return %arg0, %c0_i32, %c0_i32_0 : i32, i32, i32
  }
  func.func @transform_5(%arg0: i32) -> (i32, i32, i32) {
    %c0_i32 = arith.constant 0 : i32
    %c0_i32_0 = arith.constant 0 : i32
    %c0_i32_1 = arith.constant 0 : i32
    return %arg0, %c0_i32, %c0_i32_0 : i32, i32, i32
  }
  func.func @transform_6(%arg0: i32) -> (i32, i32, i32) {
    %c0_i32 = arith.constant 0 : i32
    %c0_i32_0 = arith.constant 0 : i32
    %c0_i32_1 = arith.constant 0 : i32
    return %arg0, %c0_i32, %c0_i32_0 : i32, i32, i32
  }
}

</mosaic_0001>

<bundles_post_ra>
// kernel: tile.5
= control target key start
LH: loop header
LB: loop body
LE: loop exit
PB: predicated region body
PF: predicated region fallthrough
CT: control target
= control target key end

     0   :  { %vm9_vm0 = vcmask 31744   ;;  %vm13_vm1 = vcmask 130048   ;;  %s200_s14 = smov 124   ;;  %vm23_vm2 = vcmask 64512   ;;  %s201_s19 = smov 112   ;;  %vm3_vm3 = vcmask 162816   ;;  %s305_s0 = inlined_call_operand.vmem [shape: f32[20,20], index: 0, kind: input, shape index: {}]   ;;  %s306_s1 = inlined_call_operand.vmem [shape: f32[400], index: 1, kind: output, shape index: {}]  }
   0x1   :  { %v159_v0 = vld [vmem:[%s305_s0 + $0x13] sm:$0x1]   ;;  %v163_v3 = vld [vmem:[%s305_s0 + $0xc] sm:$0x1]   ;;  %v161_v6 = vld [vmem:[%s305_s0 + $0x6] sm:$0x1]  }
   0x2   :  { %v160_v1 = vld [vmem:[%s305_s0 + $0x13] sm:$0x1]   ;;  %v164_v4 = vld [vmem:[%s305_s0 + $0xc] sm:$0x1]   ;;  %v162_v7 = vld [vmem:[%s305_s0 + $0x6] sm:$0x1]  }
   0x3   :  { %v10_v2 = vsel %vm9_vm0, %v160_v1, %v159_v0  ;;  %v37_v5 = vsel %vm13_vm1, %v164_v4, %v163_v3  ;;  %v24_v8 = vsel %vm23_vm2, %v162_v7, %v161_v6  ;;  %v165_v9 = vld [vmem:[%s305_s0 + $0x12] sm:$0x1]   ;;  %s202_s22 = smov 120   ;;  %s203_s23 = smov 104   ;;  %v166_v10 = vld [vmem:[%s305_s0 + $0x5] sm:$0x1]  }
   0x4   :  { %11 = vrot.lane.b32.xlu0 %v10_v2, %s200_s14  ;;  %38 = vrot.lane.b32.xlu1 %v37_v5, %s201_s19  ;;  %v167_v11 = vld [vmem:[%s305_s0 + $0xb] sm:$0x1]   ;;  %s204_s28 = smov 100   ;;  %s205_s29 = smov 92   ;;  %v168_v12 = vld [vmem:[%s305_s0 + $0x11] sm:$0x1]  }
   0x5   :  { %v2_v13 = vld [vmem:[%s305_s0] sm:$0x1]   ;;  %v169_v14 = vld [vmem:[%s305_s0 + $0x4] sm:$0x1]   ;;  %s206_s7 = smov 84   ;;  %s207_s8 = smov 80  }
   0x6   :  { %4 = vst.msk [vmem:[#allocation0] sm:$0x1] %vm3_vm3, %v2_v13   ;;  %v170_v15 = vld [vmem:[%s305_s0 + $0xa] sm:$0x1]   ;;  %v171_v16 = vld [vmem:[%s305_s0 + $0x10] sm:$0x1]  }
   0x7   :  { %s208_s13 = smov 72   ;;  %s209_s14 = smov 64   ;;  %v172_v17 = vld [vmem:[%s305_s0 + $0x3] sm:$0x1]   ;;  %v173_v18 = vld [vmem:[%s305_s0 + $0x9] sm:$0x1]  }
   0x8   :  { %25 = vrot.lane.b32.xlu0 %v24_v8, %s202_s22  ;;  %48 = vrot.lane.b32.xlu1 %v165_v9, %s203_s23  ;;  %s210_s19 = smov 60   ;;  %s211_s20 = smov 52   ;;  %v174_v19 = vld [vmem:[%s305_s0 + $0xf] sm:$0x1]   ;;  %v175_v20 = vld [vmem:[%s305_s0 + $0x2] sm:$0x1]  }
   0x9   :  { %s212_s25 = smov 44   ;;  %s213_s26 = smov 40   ;;  %v176_v21 = vld [vmem:[%s305_s0 + $0x8] sm:$0x1]   ;;  %v177_v22 = vld [vmem:[%s305_s0 + $0xe] sm:$0x1]  }
   0xa   :  { %s214_s2 = smov 32   ;;  %s215_s3 = smov 24   ;;  %v178_v23 = vld [vmem:[%s305_s0 + $0x1] sm:$0x1]   ;;  %v179_v24 = vld [vmem:[%s305_s0 + $0x7] sm:$0x1]  }
   0xb   :  { %s217_s9 = smov 12   ;;  %v180_v25 = vld [vmem:[%s305_s0 + $0xd] sm:$0x1]   ;;  %s218_s0 = smov 4   ;;  %vm16_vm4 = vcmask 1048544   ;;  %vm27_vm5 = vcmask 97280  }
   0xc   :  { %55 = vrot.lane.b32.xlu0 %v166_v10, %s204_s28  ;;  %61 = vrot.lane.b32.xlu1 %v167_v11, %s205_s29  ;;  %vm30_vm6 = vcmask 1048512   ;;  %vm43_vm7 = vcmask 1048448   ;;  %vm50_vm8 = vcmask 1015616   ;;  %vm57_vm9 = vcmask 982816  }
   0xd   :  { %vm63_vm10 = vcmask 917216   ;;  %vm70_vm11 = vcmask 851616   ;;  %vm77_vm12 = vcmask 818816   ;;  %vm83_vm13 = vcmask 753216  }
   0xe   :  { %vm90_vm14 = vcmask 687616   ;;  %vm97_vm15 = vcmask 654816   ;;  %vm117_vm2 = vcmask 490816   ;;  %vm123_vm3 = vcmask 425216  }
  0x10   :  { %68 = vrot.lane.b32.xlu0 %v168_v12, %s206_s7  ;;  %75 = vrot.lane.b32.xlu1 %v169_v14, %s207_s8  ;;  %s216_s8 = smov 20  }
  0x14   :  { %81 = vrot.lane.b32.xlu0 %v170_v15, %s208_s13  ;;  %88 = vrot.lane.b32.xlu1 %v171_v16, %s209_s14 }
  0x18   :  { %95 = vrot.lane.b32.xlu0 %v172_v17, %s210_s19  ;;  %101 = vrot.lane.b32.xlu1 %v173_v18, %s211_s20 }
  0x1c   :  { %108 = vrot.lane.b32.xlu0 %v174_v19, %s212_s25  ;;  %115 = vrot.lane.b32.xlu1 %v175_v20, %s213_s26 }
  0x20   :  { %121 = vrot.lane.b32.xlu0 %v176_v21, %s214_s2  ;;  %128 = vrot.lane.b32.xlu1 %v177_v22, %s215_s3 }
  0x24   :  { %135 = vrot.lane.b32.xlu0 %v178_v23, %s216_s8  ;;  %141 = vrot.lane.b32.xlu1 %v179_v24, %s217_s9 }
  0x28   :  { %148 = vrot.lane.b32.xlu0 %v180_v25, %s218_s0 }
  0x76   :  { %v12_v26 = vpop.permute.xlu0 %11   ;;  %v39_v27 = vpop.permute.xlu1 %38  }
  0x77   :  { %15 = vst.msk [vmem:[#allocation0 + $0x3] sm:$0x1] %vm13_vm1, %v12_v26   ;;  %vm110_vm1 = vcmask 523616  }
  0x78   :  { %18 = vst.msk [vmem:[#allocation0 + $0x2] sm:$0x1] %vm16_vm4, %v12_v26   ;;  %vm130_vm4 = vcmask 359616  }
  0x79   :  { %42 = vst.msk [vmem:[#allocation0 + $0x2] sm:$0x1] %vm9_vm0, %v39_v27   ;;  %vm103_vm0 = vcmask 589216  }
  0x7a   :  { %v26_v28 = vpop.permute.xlu0 %25   ;;  %v49_v29 = vpop.permute.xlu1 %48  }
  0x7b   :  { %29 = vst.msk [vmem:[#allocation0 + $0x1] sm:$0x1] %vm27_vm5, %v26_v28   ;;  %vm137_vm5 = vcmask 326816  }
  0x7c   :  { %31 = vst.msk [vmem:[#allocation0] sm:$0x1] %vm30_vm6, %v26_v28   ;;  %vm143_vm6 = vcmask 261216  }
  0x7d   :  { %45 = vst.msk [vmem:[#allocation0 + $0x1] sm:$0x1] %vm43_vm7, %v39_v27   ;;  %vm150_vm7 = vcmask 195616  }
  0x7e   :  { %52 = vst.msk [vmem:[#allocation0 + $0x2] sm:$0x1] %vm50_vm8, %v49_v29   ;;  %v56_v30 = vpop.permute.xlu0 %55   ;;  %v62_v31 = vpop.permute.xlu1 %61  }
  0x7f   :  { %58 = vst.msk [vmem:[#allocation0] sm:$0x1] %vm57_vm9, %v56_v30  }
  0x80   :  { %65 = vst.msk [vmem:[#allocation0 + $0x1] sm:$0x1] %vm63_vm10, %v62_v31  }
  0x82   :  { %v69_v32 = vpop.permute.xlu0 %68   ;;  %v76_v33 = vpop.permute.xlu1 %75  }
  0x83   :  { %72 = vst.msk [vmem:[#allocation0 + $0x2] sm:$0x1] %vm70_vm11, %v69_v32  }
  0x84   :  { %78 = vst.msk [vmem:[#allocation0] sm:$0x1] %vm77_vm12, %v76_v33  }
  0x86   :  { %v82_v34 = vpop.permute.xlu0 %81   ;;  %v89_v35 = vpop.permute.xlu1 %88  }
  0x87   :  { %85 = vst.msk [vmem:[#allocation0 + $0x1] sm:$0x1] %vm83_vm13, %v82_v34  }
  0x88   :  { %92 = vst.msk [vmem:[#allocation0 + $0x2] sm:$0x1] %vm90_vm14, %v89_v35  }
  0x8a   :  { %v96_v36 = vpop.permute.xlu0 %95   ;;  %v102_v37 = vpop.permute.xlu1 %101  }
  0x8b   :  { %98 = vst.msk [vmem:[#allocation0] sm:$0x1] %vm97_vm15, %v96_v36  }
  0x8c   :  { %105 = vst.msk [vmem:[#allocation0 + $0x1] sm:$0x1] %vm103_vm0, %v102_v37  }
  0x8e   :  { %v109_v38 = vpop.permute.xlu0 %108   ;;  %v116_v39 = vpop.permute.xlu1 %115  }
  0x8f   :  { %112 = vst.msk [vmem:[#allocation0 + $0x2] sm:$0x1] %vm110_vm1, %v109_v38  }
  0x90   :  { %118 = vst.msk [vmem:[#allocation0] sm:$0x1] %vm117_vm2, %v116_v39  }
  0x92   :  { %v122_v40 = vpop.permute.xlu0 %121   ;;  %v129_v41 = vpop.permute.xlu1 %128  }
  0x93   :  { %125 = vst.msk [vmem:[#allocation0 + $0x1] sm:$0x1] %vm123_vm3, %v122_v40  }
  0x94   :  { %132 = vst.msk [vmem:[#allocation0 + $0x2] sm:$0x1] %vm130_vm4, %v129_v41  }
  0x96   :  { %v136_v42 = vpop.permute.xlu0 %135   ;;  %v142_v43 = vpop.permute.xlu1 %141  }
  0x97   :  { %138 = vst.msk [vmem:[#allocation0] sm:$0x1] %vm137_vm5, %v136_v42  }
  0x98   :  { %145 = vst.msk [vmem:[#allocation0 + $0x1] sm:$0x1] %vm143_vm6, %v142_v43  }
  0x9a   :  { %v149_v44 = vpop.permute.xlu0 %148  }
  0x9b   :  { %152 = vst.msk [vmem:[#allocation0 + $0x2] sm:$0x1] %vm150_vm7, %v149_v44  }
  0xa2   :  { %v156_v45 = vld [vmem:[#allocation0] sm:$0xf] }
  0xa3   :  { %158 = vst [vmem:[%s306_s1] sm:$0xf] %v156_v45 }

// kernel: tile.6
= control target key start
LH: loop header
LB: loop body
LE: loop exit
PB: predicated region body
PF: predicated region fallthrough
CT: control target
= control target key end

     0   :  { %s58_s0 = inlined_call_operand.vmem [shape: f32[400], index: 0, kind: input, shape index: {}]   ;;  %s59_s1 = inlined_call_operand.vmem [shape: f32[2,400], index: 1, kind: output, shape index: {}]  }
   0x1   :  { %v4_v0 = vld [vmem:[%s58_s0] ss:$0 sm:$0xff]  ;;  %v18_v1 = vld [vmem:[%s58_s0 + $0x1] ss:$0 sm:$0xff]  ;;  %v20_v2 = vld [vmem:[%s58_s0 + $0x2] ss:$0 sm:$0xff] }
   0x2   :  { %5 = vst [vmem:[%s59_s1] sm:$0x3] %v4_v0  ;;  %19 = vst [vmem:[%s59_s1 + $0x2] sm:$0x3] %v18_v1  ;;  %v22_v3 = vld [vmem:[%s58_s0 + $0x3] ss:$0 sm:$0xff] }
   0x3   :  { %21 = vst [vmem:[%s59_s1 + $0x4] sm:$0x3] %v20_v2  ;;  %23 = vst [vmem:[%s59_s1 + $0x6] sm:$0x3] %v22_v3 }

// kernel: tile.7
= control target key start
LH: loop header
LB: loop body
LE: loop exit
PB: predicated region body
PF: predicated region fallthrough
CT: control target
= control target key end

     0   :  { %vm31_vm0 = vcmask 916480   ;;  %vm22_vm1 = vcmask 130048   ;;  %s58_s17 = smov 16   ;;  %vm38_vm2 = vcmask 261248   ;;  %vm45_vm3 = vcmask 1047680   ;;  %s96_s0 = inlined_call_operand.vmem [shape: f32[2,400], index: 0, kind: input, shape index: {}]   ;;  %s97_s1 = inlined_call_operand.vmem [shape: f32[800], index: 1, kind: output, shape index: {}]  }
   0x1   :  { %v50_v0 = vld [vmem:[%s96_s0 + $0x6] sm:$0x3]  ;;  %v51_v1 = vld [vmem:[%s96_s0 + $0x4] sm:$0x3]  ;;  %v52_v2 = vld [vmem:[%s96_s0 + $0x2] sm:$0x3] }
   0x2   :  { %8 = vst [vmem:[#allocation0 + $0x18] sm:$0x3] %v50_v0  ;;  %13 = vst [vmem:[#allocation0 + $0x10] sm:$0x3] %v51_v1  ;;  %v18_v3 = vld [vmem:[%s96_s0] sm:$0x3] }
   0x3   :  { %17 = vst [vmem:[#allocation0 + $0x8] sm:$0x3] %v52_v2  ;;  %19 = vst [vmem:[#allocation0] sm:$0x3] %v18_v3 }
   0x9   :  { %v30_v4 = vld [vmem:[#allocation0 + $0x19] sm:$0x1]   ;;  %v21_v5 = vld [vmem:[#allocation0 + $0x18] sm:$0x1]  }
   0xa   :  { %v28_v6 = vld [vmem:[#allocation0 + $0x1] ss:$8 sm:$0x7]   ;;  %v25_v7 = vld [vmem:[#allocation0] ss:$8 sm:$0x7]  }
   0xb   :  { %53 = vst.msk [vmem:[%s97_s1 + $0x3] sm:$0x1] %vm22_vm1, %v21_v5   ;;  %v32_v8 = vsel %vm31_vm0, %v30_v4, %v28_v6  ;;  %26 = vst [vmem:[%s97_s1] sm:$0x7] %v25_v7   ;;  %v42_v9 = vld [vmem:[#allocation0 + $0x1] ss:$8 sm:$0x7]  }
   0xc   :  { %33 = vrot.lane.b32.xlu0 %v32_v8, %s58_s17 }
  0x10   :  { %43 = vrot.lane.b32.xlu0 %v42_v9, %s58_s17 }
  0x7e   :  { %v34_v10 = vpop.permute.xlu0 %33  }
  0x7f   :  { %54 = vst.msk [vmem:[%s97_s1 + $0x4] sm:$0x7] %vm22_vm1, %v34_v10  }
  0x80   :  { %55 = vst.msk [vmem:[%s97_s1 + $0x6] sm:$0x1] %vm38_vm2, %v34_v10  }
  0x82   :  { %v44_v11 = vpop.permute.xlu0 %43  }
  0x83   :  { %56 = vst.msk [vmem:[%s97_s1 + $0x3] sm:$0x7] %vm45_vm3, %v44_v11  }

// kernel: gaussian_conv2d2.1
= control target key start
LH: loop header
LB: loop body
LE: loop exit
PB: predicated region body
PF: predicated region fallthrough
CT: control target
= control target key end

     0   :  { %11 = vsyncpa [#allocation5], 0  ;;  %s2731_s0 = inlined_call_operand.vmem [shape: f32[9], index: 0, kind: input, shape index: {}]   ;;  %s2732_s1 = inlined_call_operand.vmem [shape: f32[4,800], index: 1, kind: input, shape index: {}]   ;;  %s2733_s2 = inlined_call_operand.vmem [shape: f32[1,758], index: 2, kind: input, shape index: {}]   ;;  %s2734_s3 = inlined_call_operand.vmem [shape: f32[4,1,72], index: 3, kind: input, shape index: {}]   ;;  %s2735_s4 = inlined_call_operand.vmem [shape: f32[4,1,1], index: 4, kind: input, shape index: {}]   ;;  %s2736_s5 = inlined_call_operand.vmem [shape: f32[4,1,1], index: 5, kind: input, shape index: {}]   ;;  %s2737_s6 = inlined_call_operand.vmem [shape: f32[4,1,758], index: 6, kind: output, shape index: {}]  }
   0x1   :  { %s18_s23 = sshll.u32 %s2731_s0, 4  ;;  %s19_s23 = int_to_ptr.vmem [resolvable:$true] %s18_s23 }
   0x2   :  { %s1734_s24 = scalar_lea.vmem %s19_s23, 16  ;;  %p1739_p1 = scmp.lt.s32.totalorder %s19_s23, %s19_s23 }
   0x3   :  { %p1735_p0 = scmp.ne.s32.totalorder %s19_s23, %s1734_s24  ;;  %p1740_p2 = scmp.lt.s32.totalorder %s1734_s24, %s1734_s24 }
   0x5   :  { %p1741_p3 = por %p1740_p2, %p1739_p1 }
   0x7   :  { %p1742_p4 = pnand %p1741_p3, %p1735_p0 }
   0x9   :  { %1745 = shalt.err (!%p1742_p4)
}
   0xa   :  { %s1748_s25 = smov [#allocation4]  }
   0xb   :  { %21 = dma.vmem_to_smem %s19_s23, 16, %s1748_s25, [#allocation5]  }
   0xc   :  { %1746 = dma.done.wait [#allocation5], 16  }
   0xd   :  { %1747 = vsyncadd [#allocation5], 4294967280 }
   0xe   :  { %35 = sfence }
   0xf   :  { %s1653_s26 = sld [smem:[#allocation4 + $0x1]]  ;;  %v1802_v0 = vld [vmem:[%s2732_s1] sm:$0xff]  ;;  %v1807_v1 = vld [vmem:[%s2732_s1 + $0x8] sm:$0xff]  ;;  %s1654_s30 = sld [smem:[#allocation4 + $0x2]]  ;;  %v1824_v4 = vld [vmem:[%s2732_s1 + $0x10] sm:$0xff]  ;;  %vm424_vm0 = vcmask 965636  }
  0x10   :  { %420 = vst [vmem:[#allocation3 + $0x8] sm:$0xf0] %v1802_v0  ;;  %422 = vst [vmem:[#allocation3 + $0x18] sm:$0xf0] %v1807_v1  ;;  %v1813_v2 = vcombine.low %v1807_v1, %v1807_v1  ;;  %v1817_v3 = vcombine.low %v1802_v0, %v1802_v0  ;;  %s1655_s9 = sld [smem:[#allocation4 + $0x3]]  ;;  %s1749_s10 = smov 127   ;;  %v1842_v17 = vcombine.low %v1824_v4, %v1824_v4 }
  0x11   :  { %s1656_s11 = sld [smem:[#allocation4 + $0x4]]  ;;  %s1750_s12 = smov 126   ;;  %v1880_v38 = vld [vmem:[%s2732_s1 + $0x18] sm:$0xf]  ;;  %425 = vst.msk [vmem:[#allocation3 + $0x28] sm:$0xf0] %vm424_vm0, %v1824_v4 }
  0x12   :  { %421 = vst [vmem:[#allocation3 + $0x10] sm:$0xf0] %v1813_v2  ;;  %419 = vst [vmem:[#allocation3] sm:$0xf0] %v1817_v3  ;;  %s1657_s13 = sld [smem:[#allocation4 + $0x5]]  ;;  %s1751_s14 = smov 108  }
  0x13   :  { %s1658_s15 = sld [smem:[#allocation4 + $0x6]]  ;;  %423 = vst [vmem:[#allocation3 + $0x20] sm:$0xf0] %v1842_v17  ;;  %s1752_s16 = smov 107   ;;  %vm70_vm1 = vcmask 1043456   ;;  %vm72_vm2 = vcmask 1039360  }
  0x14   :  { %s1659_s17 = sld [smem:[#allocation4 + $0x7]]  ;;  %s1753_s18 = smov 106   ;;  %vm101_vm3 = vcmask 1031168   ;;  %vm135_vm4 = vcmask 883712   ;;  %vm170_vm5 = vcmask 875520   ;;  %vm205_vm6 = vcmask 867328  }
  0x15   :  { %v54_v5 = vstv %s1653_s26  ;;  %v84_v8 = vstv %s1654_s30  ;;  %s1660_s19 = sld [smem:[#allocation4 + $0x8]]  ;;  %s1754_s20 = smov 88   ;;  %vm240_vm7 = vcmask 719872   ;;  %vm275_vm8 = vcmask 711680  }
  0x16   :  { %v57_v6 = vmul.f32 %v54_v5, %v1824_v4  ;;  %v55_v7 = vmul.f32 %v54_v5, %v1802_v0  ;;  %v85_v9 = vmul.f32 %v84_v8, %v1802_v0  ;;  %v56_v10 = vmul.f32 %v54_v5, %v1807_v1  ;;  %s1755_s21 = smov 87   ;;  %s1756_s22 = smov 86  }
  0x17   :  { %v87_v11 = vmul.f32 %v84_v8, %v1824_v4  ;;  %v86_v12 = vmul.f32 %v84_v8, %v1807_v1  ;;  %v113_v13 = vstv %s1655_s9  ;;  %v148_v16 = vstv %s1656_s11  ;;  %s45_s1 = sld [smem:[#allocation4]]  ;;  %s1758_s27 = smov 21  }
  0x18   :  { %65 = vrot.lane.b32.xlu1 %v57_v6, %s1749_s10  ;;  %61 = vrot.lane.b32.xlu0 %v55_v7, %s1749_s10  ;;  %v115_v14 = vmul.f32 %v113_v13, %v1807_v1  ;;  %v114_v15 = vmul.f32 %v113_v13, %v1802_v0  ;;  %v149_v18 = vmul.f32 %v148_v16, %v1802_v0  ;;  %v183_v22 = vstv %s1657_s13 }
  0x19   :  { %v116_v19 = vmul.f32 %v113_v13, %v1824_v4  ;;  %v151_v20 = vmul.f32 %v148_v16, %v1824_v4  ;;  %v150_v21 = vmul.f32 %v148_v16, %v1807_v1  ;;  %v185_v23 = vmul.f32 %v183_v22, %v1807_v1 }
  0x1a   :  { %v184_v24 = vmul.f32 %v183_v22, %v1802_v0  ;;  %v218_v25 = vstv %s1658_s15  ;;  %v186_v27 = vmul.f32 %v183_v22, %v1824_v4  ;;  %v253_v30 = vstv %s1659_s17 }
  0x1b   :  { %v219_v26 = vmul.f32 %v218_v25, %v1802_v0  ;;  %v221_v28 = vmul.f32 %v218_v25, %v1824_v4  ;;  %v220_v29 = vmul.f32 %v218_v25, %v1807_v1  ;;  %v255_v31 = vmul.f32 %v253_v30, %v1807_v1 }
  0x1c   :  { %91 = vrot.lane.b32.xlu1 %v85_v9, %s1750_s12  ;;  %63 = vrot.lane.b32.xlu0 %v56_v10, %s1749_s10  ;;  %v254_v32 = vmul.f32 %v253_v30, %v1802_v0  ;;  %v288_v33 = vstv %s1660_s19  ;;  %v256_v35 = vmul.f32 %v253_v30, %v1824_v4  ;;  %v152_v39 = vmul.f32 %v148_v16, %v1880_v38 }
  0x1d   :  { %v289_v34 = vmul.f32 %v288_v33, %v1802_v0  ;;  %v291_v36 = vmul.f32 %v288_v33, %v1824_v4  ;;  %v290_v37 = vmul.f32 %v288_v33, %v1807_v1  ;;  %v117_v40 = vmul.f32 %v113_v13, %v1880_v38 }
  0x1e   :  { %v222_v41 = vmul.f32 %v218_v25, %v1880_v38  ;;  %v187_v42 = vmul.f32 %v183_v22, %v1880_v38  ;;  %v292_v43 = vmul.f32 %v288_v33, %v1880_v38  ;;  %v257_v44 = vmul.f32 %v253_v30, %v1880_v38 }
  0x1f   :  { %v46_v5 = vstv %s45_s1  ;;  %v328_v9 = vlaneseq  ;;  %vm310_vm9 = vcmask 703488   ;;  %vm325_vm10 = vcmask 257024  }
  0x20   :  { %95 = vrot.lane.b32.xlu1 %v87_v11, %s1750_s12  ;;  %93 = vrot.lane.b32.xlu0 %v86_v12, %s1750_s12  ;;  %v48_v7 = vmul.f32 %v46_v5, %v1807_v1  ;;  %v47_v30 = vmul.f32 %v46_v5, %v1802_v0  ;;  %vm389_vm11 = vcmask 84992   ;;  %vm373_vm12 = vcmask 171008  }
  0x21   :  { %vm383_vm13 = vcmask 1043624   ;;  %vm384_vm14 = vcmask 1047556   ;;  %vm408_vm15 = vcmask 961536  }
  0x24   :  { %124 = vrot.lane.b32.xlu1 %v115_v14, %s1751_s14  ;;  %122 = vrot.lane.b32.xlu0 %v114_v15, %s1751_s14 }
  0x28   :  { %157 = vrot.lane.b32.xlu1 %v149_v18, %s1752_s16  ;;  %126 = vrot.lane.b32.xlu0 %v116_v19, %s1751_s14 }
  0x2c   :  { %161 = vrot.lane.b32.xlu1 %v151_v20, %s1752_s16  ;;  %159 = vrot.lane.b32.xlu0 %v150_v21, %s1752_s16  ;;  %v2046_v20 = vshrl.u32 %v328_v9, 7 }
  0x2e   :  { %v338_v33 = vsub.s32 2, %v2046_v20 }
  0x30   :  { %194 = vrot.lane.b32.xlu1 %v185_v23, %s1753_s18  ;;  %192 = vrot.lane.b32.xlu0 %v184_v24, %s1753_s18 }
  0x34   :  { %227 = vrot.lane.b32.xlu1 %v219_v26, %s1754_s20  ;;  %196 = vrot.lane.b32.xlu0 %v186_v27, %s1753_s18 }
  0x38   :  { %231 = vrot.lane.b32.xlu1 %v221_v28, %s1754_s20  ;;  %229 = vrot.lane.b32.xlu0 %v220_v29, %s1754_s20  ;;  %v49_v28 = vmul.f32 %v46_v5, %v1824_v4 }
  0x3c   :  { %264 = vrot.lane.b32.xlu1 %v255_v31, %s1755_s21  ;;  %262 = vrot.lane.b32.xlu0 %v254_v32, %s1755_s21 }
  0x40   :  { %297 = vrot.lane.b32.xlu1 %v289_v34, %s1756_s22  ;;  %266 = vrot.lane.b32.xlu0 %v256_v35, %s1755_s21  ;;  %v342_v34 = vsub.s32 3, %v2046_v20 }
  0x44   :  { %301 = vrot.lane.b32.xlu1 %v291_v36, %s1756_s22  ;;  %299 = vrot.lane.b32.xlu0 %v290_v37, %s1756_s22  ;;  %v2081_v36 = vld [vmem:[%s2733_s2] sm:$0x3f] }
  0x48   :  { %163 = vrot.lane.b32.xlu1 %v152_v39, %s1752_s16  ;;  %128 = vrot.lane.b32.xlu0 %v117_v40, %s1751_s14 }
  0x4c   :  { %233 = vrot.lane.b32.xlu1 %v222_v41, %s1754_s20  ;;  %198 = vrot.lane.b32.xlu0 %v187_v42, %s1753_s18 }
  0x50   :  { %303 = vrot.lane.b32.xlu1 %v292_v43, %s1756_s22  ;;  %268 = vrot.lane.b32.xlu0 %v257_v44, %s1755_s21 }
  0x54   :  { %466 = vrot.lane.b32.xlu1 %v1802_v0, %s1749_s10  ;;  %468 = vrot.lane.b32.xlu0 %v1813_v2, %s1749_s10 }
  0x58   :  { %533 = vrot.lane.b32.xlu1 %v1802_v0, %s1750_s12  ;;  %464 = vrot.lane.b32.xlu0 %v1817_v3, %s1749_s10 }
  0x5c   :  { %607 = vrot.lane.b32.xlu1 %v1802_v0, %s1751_s14  ;;  %535 = vrot.lane.b32.xlu0 %v1813_v2, %s1750_s12 }
  0x60   :  { %682 = vrot.lane.b32.xlu1 %v1802_v0, %s1752_s16  ;;  %609 = vrot.lane.b32.xlu0 %v1813_v2, %s1751_s14 }
  0x64   :  { %757 = vrot.lane.b32.xlu1 %v1802_v0, %s1753_s18  ;;  %531 = vrot.lane.b32.xlu0 %v1817_v3, %s1750_s12 }
  0x68   :  { %832 = vrot.lane.b32.xlu1 %v1802_v0, %s1754_s20  ;;  %605 = vrot.lane.b32.xlu0 %v1817_v3, %s1751_s14 }
  0x6c   :  { %907 = vrot.lane.b32.xlu1 %v1802_v0, %s1755_s21  ;;  %684 = vrot.lane.b32.xlu0 %v1813_v2, %s1752_s16 }
  0x70   :  { %470 = vrot.lane.b32.xlu1 %v1807_v1, %s1749_s10  ;;  %759 = vrot.lane.b32.xlu0 %v1813_v2, %s1753_s18 }
  0x74   :  { %537 = vrot.lane.b32.xlu1 %v1807_v1, %s1750_s12  ;;  %680 = vrot.lane.b32.xlu0 %v1817_v3, %s1752_s16 }
  0x78   :  { %611 = vrot.lane.b32.xlu1 %v1807_v1, %s1751_s14  ;;  %755 = vrot.lane.b32.xlu0 %v1817_v3, %s1753_s18 }
  0x7c   :  { %982 = vrot.lane.b32.xlu1 %v1802_v0, %s1756_s22  ;;  %834 = vrot.lane.b32.xlu0 %v1813_v2, %s1754_s20 }
  0x80   :  { %615 = vrot.lane.b32.xlu1 %v1824_v4, %s1751_s14  ;;  %909 = vrot.lane.b32.xlu0 %v1813_v2, %s1755_s21 }
  0x84   :  { %686 = vrot.lane.b32.xlu1 %v1807_v1, %s1752_s16  ;;  %830 = vrot.lane.b32.xlu0 %v1817_v3, %s1754_s20 }
  0x88   :  { %761 = vrot.lane.b32.xlu1 %v1807_v1, %s1753_s18  ;;  %905 = vrot.lane.b32.xlu0 %v1817_v3, %s1755_s21 }
  0x8a   :  { %v1952_v45 = vpop.permute.xlu1 %65  ;;  %v1954_v46 = vpop.permute.xlu0 %61 }
  0x8b   :  { %v69_v60 = vrot.slane %v1952_v45, 4  ;;  %v67_v41 = vrot.slane %v1954_v46, 4 }
  0x8c   :  { %690 = vrot.lane.b32.xlu1 %v1824_v4, %s1752_s16  ;;  %472 = vrot.lane.b32.xlu0 %v1842_v17, %s1749_s10 }
  0x8e   :  { %v1960_v47 = vpop.permute.xlu1 %91  ;;  %v1962_v48 = vpop.permute.xlu0 %63 }
  0x8f   :  { %v68_v57 = vrot.slane %v1962_v48, 4 }
  0x90   :  { %765 = vrot.lane.b32.xlu1 %v1824_v4, %s1753_s18  ;;  %539 = vrot.lane.b32.xlu0 %v1842_v17, %s1750_s12 }
  0x91   :  { %v74_v61 = vsel %vm70_vm1, %v68_v57, %v69_v60 }
  0x92   :  { %v1970_v49 = vpop.permute.xlu1 %95  ;;  %v1972_v50 = vpop.permute.xlu0 %93  ;;  %v75_v8 = vsel %vm72_vm2, %v1962_v48, %v74_v61  ;;  %v1757_v61 = vmov 0.0  }
  0x93   :  { %v99_v62 = vrot.slane %v1970_v49, 4  ;;  %v98_v63 = vrot.slane %v1972_v50, 4  ;;  %v81_v18 = vadd.f32 %v75_v8, %v48_v7  ;;  %326 = vst.msk [vmem:[#allocation2 + $0x18] sm:$0xf] %vm325_vm10, %v1757_v61  ;;  %322 = vst [vmem:[#allocation2] sm:$0xff] %v1757_v61  ;;  %1165 = vmatprep.mubr.f32.mxu0 %v1757_v61  ;;  %1236 = vmatprep.mubr.f32.mxu1 %v1757_v61 }
  0x94   :  { %836 = vrot.lane.b32.xlu1 %v1807_v1, %s1754_s20  ;;  %613 = vrot.lane.b32.xlu0 %v1842_v17, %s1751_s14  ;;  %v339_v8 = vrot.slane %v2081_v36, %v338_v33  ;;  %vm385_vm10 = vmor %vm384_vm14, %vm383_vm13 }
  0x95   :  { %v103_v10 = vsel %vm70_vm1, %v98_v63, %v99_v62 }
  0x96   :  { %v1978_v51 = vpop.permute.xlu1 %124  ;;  %v1980_v52 = vpop.permute.xlu0 %122  ;;  %v104_v19 = vsel %vm101_vm3, %v1972_v50, %v103_v10  ;;  %v343_v10 = vrot.slane %v2081_v36, %v342_v34 }
  0x97   :  { %v131_v11 = vrot.slane %v1978_v51, 4  ;;  %v110_v29 = vadd.f32 %v104_v19, %v81_v18  ;;  %v130_v5 = vrot.slane %v1980_v52, 4  ;;  %v71_v18 = vsel %vm70_vm1, %v67_v41, %v68_v57 }
  0x98   :  { %911 = vrot.lane.b32.xlu1 %v1807_v1, %s1755_s21  ;;  %984 = vrot.lane.b32.xlu0 %v1813_v2, %s1756_s22  ;;  %v2125_v57 = vsub.s32 0, %v2046_v20  ;;  %v73_v41 = vsel %vm72_vm2, %v1954_v46, %v71_v18  ;;  %v353_v50 = vcombine.low %v339_v8, %v343_v10 }
  0x9a   :  { %v1986_v53 = vpop.permute.xlu1 %157  ;;  %v1988_v54 = vpop.permute.xlu0 %126 }
  0x9b   :  { %v132_v6 = vrot.slane %v1988_v54, 4 }
  0x9c   :  { %840 = vrot.lane.b32.xlu1 %v1824_v4, %s1754_s20  ;;  %474 = vrot.lane.b32.xlu0 %v1824_v4, %s1749_s10 }
  0x9d   :  { %v137_v15 = vsel %vm70_vm1, %v131_v11, %v132_v6 }
  0x9e   :  { %v1994_v55 = vpop.permute.xlu1 %161  ;;  %v1996_v56 = vpop.permute.xlu0 %159  ;;  %v138_v25 = vsel %vm135_vm4, %v1978_v51, %v137_v15  ;;  %v97_v15 = vrot.slane %v1960_v47, 4 }
  0x9f   :  { %v167_v12 = vrot.slane %v1994_v55, 4  ;;  %v166_v13 = vrot.slane %v1996_v56, 4  ;;  %v145_v35 = vadd.f32 %v138_v25, %v110_v29  ;;  %v76_v25 = vsel %vm72_vm2, %v1952_v45, %v69_v60 }
  0xa0   :  { %915 = vrot.lane.b32.xlu1 %v1824_v4, %s1755_s21  ;;  %980 = vrot.lane.b32.xlu0 %v1817_v3, %s1756_s22  ;;  %v105_v60 = vsel %vm101_vm3, %v1970_v49, %v99_v62 }
  0xa1   :  { %v172_v21 = vsel %vm70_vm1, %v166_v13, %v167_v12 }
  0xa2   :  { %v2003_v58 = vpop.permute.xlu1 %194  ;;  %v2005_v59 = vpop.permute.xlu0 %192  ;;  %v173_v32 = vsel %vm170_vm5, %v1996_v56, %v172_v21 }
  0xa3   :  { %v201_v22 = vrot.slane %v2003_v58, 4  ;;  %v180_v42 = vadd.f32 %v173_v32, %v145_v35  ;;  %v334_v32 = vsub.s32 1, %v2046_v20  ;;  %v100_v35 = vsel %vm70_vm1, %v97_v15, %v98_v63 }
  0xa4   :  { %986 = vrot.lane.b32.xlu1 %v1807_v1, %s1756_s22  ;;  %v165_v63 = vrot.slane %v1986_v53, 4  ;;  %v102_v49 = vsel %vm101_vm3, %v1960_v47, %v100_v35  ;;  %v350_v47 = vsub.s32 5, %v2046_v20 }
  0xa6   :  { %v2017_v2 = vpop.permute.xlu1 %227  ;;  %v2019_v3 = vpop.permute.xlu0 %196 }
  0xa7   :  { %v202_v16 = vrot.slane %v2019_v3, 4 }
  0xa9   :  { %v207_v31 = vsel %vm70_vm1, %v201_v22, %v202_v16 }
  0xaa   :  { %v2033_v14 = vpop.permute.xlu1 %231  ;;  %v2035_v1 = vpop.permute.xlu0 %229  ;;  %v208_v37 = vsel %vm205_vm6, %v2003_v58, %v207_v31 }
  0xab   :  { %v237_v23 = vrot.slane %v2033_v14, 4  ;;  %v236_v24 = vrot.slane %v2035_v1, 4  ;;  %v215_v19 = vadd.f32 %v208_v37, %v180_v42  ;;  %v134_v42 = vsel %vm70_vm1, %v130_v5, %v131_v11 }
  0xac   :  { %v346_v11 = vsub.s32 4, %v2046_v20  ;;  %v169_v5 = vsel %vm70_vm1, %v165_v63, %v166_v13 }
  0xad   :  { %v242_v0 = vsel %vm70_vm1, %v236_v24, %v237_v23 }
  0xae   :  { %v2058_v26 = vpop.permute.xlu1 %264  ;;  %v2060_v27 = vpop.permute.xlu0 %262  ;;  %v243_v7 = vsel %vm240_vm7, %v2035_v1, %v242_v0 }
  0xaf   :  { %v271_v43 = vrot.slane %v2058_v26, 4  ;;  %v250_v0 = vadd.f32 %v243_v7, %v215_v19  ;;  %v200_v7 = vrot.slane %v2005_v59, 4 }
  0xb2   :  { %v2085_v39 = vpop.permute.xlu1 %297  ;;  %v2087_v40 = vpop.permute.xlu0 %266 }
  0xb3   :  { %v272_v44 = vrot.slane %v2087_v40, 4 }
  0xb5   :  { %v277_v21 = vsel %vm70_vm1, %v271_v43, %v272_v44 }
  0xb6   :  { %v2118_v29 = vpop.permute.xlu1 %301  ;;  %v278_v31 = vsel %vm275_vm8, %v2058_v26, %v277_v21  ;;  %v2122_v48 = vpop.permute.xlu0 %299  ;;  %v82_v21 = vadd.f32 %v76_v25, %v49_v28  ;;  %v136_v28 = vsel %vm135_vm4, %v1980_v52, %v134_v42  ;;  %v204_v25 = vsel %vm70_vm1, %v200_v7, %v201_v22 }
  0xb7   :  { %v307_v37 = vrot.slane %v2118_v29, 4  ;;  %v306_v45 = vrot.slane %v2122_v48, 4  ;;  %v285_v15 = vadd.f32 %v278_v31, %v250_v0  ;;  %v80_v0 = vadd.f32 %v73_v41, %v47_v30 }
  0xb8   :  { %v111_v31 = vadd.f32 %v105_v60, %v82_v21  ;;  %v171_v30 = vsel %vm170_vm5, %v1986_v53, %v169_v5  ;;  %v270_v52 = vrot.slane %v2060_v27, 4  ;;  %v235_v41 = vrot.slane %v2017_v2, 4 }
  0xb9   :  { %v312_v19 = vsel %vm70_vm1, %v306_v45, %v307_v37  ;;  %v109_v35 = vadd.f32 %v102_v49, %v80_v0 }
  0xba   :  { %v313_v46 = vsel %vm310_vm9, %v2122_v48, %v312_v19  ;;  %v164_v51 = vpop.permute.xlu1 %163  ;;  %v129_v62 = vpop.permute.xlu0 %128  ;;  %v239_v7 = vsel %vm70_vm1, %v235_v41, %v236_v24  ;;  %v351_v24 = vrot.slane %v2081_v36, %v350_v47 }
  0xbb   :  { %v320_v8 = vadd.f32 %v313_v46, %v285_v15  ;;  %v168_v10 = vrot.slane %v164_v51, 4  ;;  %v133_v18 = vrot.slane %v129_v62, 4  ;;  %v241_v26 = vsel %vm240_vm7, %v2017_v2, %v239_v7 }
  0xbd   :  { %v174_v56 = vsel %vm70_vm1, %v167_v12, %v168_v10  ;;  %v139_v13 = vsel %vm70_vm1, %v132_v6, %v133_v18  ;;  %v359_v48 = vmul.f32 %v353_v50, %v320_v8  ;;  %v144_v6 = vadd.f32 %v136_v28, %v109_v35 }
  0xbe   :  { %v140_v58 = vsel %vm135_vm4, %v1988_v54, %v139_v13  ;;  %v234_v60 = vpop.permute.xlu1 %233  ;;  %v199_v22 = vpop.permute.xlu0 %198  ;;  %v206_v50 = vsel %vm205_vm6, %v2005_v59, %v204_v25  ;;  %v175_v53 = vsel %vm170_vm5, %v1994_v55, %v174_v56  ;;  %v347_v54 = vrot.slane %v2081_v36, %v346_v11 }
  0xbf   :  { %v146_v42 = vadd.f32 %v140_v58, %v111_v31  ;;  %v238_v12 = vrot.slane %v234_v60, 4  ;;  %v203_v63 = vrot.slane %v199_v22, 4  ;;  %366 = vrot.lane.b32.xlu1 %v359_v48, %s1758_s27  ;;  %v179_v21 = vadd.f32 %v171_v30, %v144_v6 }
  0xc0   :  { %v274_v55 = vsel %vm70_vm1, %v270_v52, %v271_v43  ;;  %v354_v56 = vcombine.low %v347_v54, %v351_v24 }
  0xc1   :  { %v244_v15 = vsel %vm70_vm1, %v237_v23, %v238_v12  ;;  %v181_v19 = vadd.f32 %v175_v53, %v146_v42  ;;  %v209_v59 = vsel %vm70_vm1, %v202_v16, %v203_v63  ;;  %v305_v23 = vrot.slane %v2085_v39, 4 }
  0xc2   :  { %v210_v49 = vsel %vm205_vm6, %v2019_v3, %v209_v59  ;;  %v304_v1 = vpop.permute.xlu1 %303  ;;  %v269_v46 = vpop.permute.xlu0 %268  ;;  %v214_v16 = vadd.f32 %v206_v50, %v179_v21  ;;  %v245_v43 = vsel %vm240_vm7, %v2033_v14, %v244_v15  ;;  %v276_v31 = vsel %vm275_vm8, %v2060_v27, %v274_v55 }
  0xc3   :  { %v216_v51 = vadd.f32 %v210_v49, %v181_v19  ;;  %v308_v62 = vrot.slane %v304_v1, 4  ;;  %v273_v5 = vrot.slane %v269_v46, 4  ;;  %v309_v3 = vsel %vm70_vm1, %v305_v23, %v306_v45 }
  0xc4   :  { %v331_v14 = vrot.slane %v2081_v36, %v2125_v57  ;;  %v335_v45 = vrot.slane %v2081_v36, %v334_v32  ;;  %v249_v28 = vadd.f32 %v241_v26, %v214_v16 }
  0xc5   :  { %v314_v8 = vsel %vm70_vm1, %v307_v37, %v308_v62  ;;  %v279_v10 = vsel %vm70_vm1, %v272_v44, %v273_v5  ;;  %v251_v18 = vadd.f32 %v245_v43, %v216_v51 }
  0xc6   :  { %v280_v2 = vsel %vm275_vm8, %v2087_v40, %v279_v10  ;;  %v467_v0 = vpop.permute.xlu1 %466  ;;  %v469_v37 = vpop.permute.xlu0 %468  ;;  %v315_v27 = vsel %vm310_vm9, %v2118_v29, %v314_v8  ;;  %v311_v40 = vsel %vm310_vm9, %v2085_v39, %v309_v3  ;;  %v284_v13 = vadd.f32 %v276_v31, %v249_v28 }
  0xc7   :  { %v286_v25 = vadd.f32 %v280_v2, %v251_v18  ;;  %v477_v44 = vsel %vm72_vm2, %v467_v0, %v469_v37  ;;  %v352_v58 = vcombine.low %v331_v14, %v335_v45  ;;  %v2230_v39 = vcombine.low %v1880_v38, %v1880_v38 }
  0xc8   :  { %488 = vst [vmem:[#allocation3 + $0x38] sm:$0xf0] %v477_v44  ;;  %v319_v36 = vadd.f32 %v311_v40, %v284_v13 }
  0xc9   :  { %v321_v48 = vadd.f32 %v315_v27, %v286_v25 }
  0xca   :  { %v534_v35 = vpop.permute.xlu1 %533  ;;  %v465_v30 = vpop.permute.xlu0 %464  ;;  %v358_v42 = vmul.f32 %v352_v58, %v319_v36 }
  0xcb   :  { %v360_v52 = vmul.f32 %v354_v56, %v321_v48  ;;  %v476_v60 = vsel %vm72_vm2, %v465_v30, %v467_v0 }
  0xcc   :  { %487 = vst [vmem:[#allocation3 + $0x30] sm:$0xf0] %v476_v60 }
  0xcd   :  { %368 = vrot.lane.b32.xlu0 %v360_v52, %s1758_s27 }
  0xce   :  { %v608_v22 = vpop.permute.xlu1 %607  ;;  %v536_v41 = vpop.permute.xlu0 %535 }
  0xcf   :  { %v544_v29 = vsel %vm101_vm3, %v534_v35, %v536_v41 }
  0xd0   :  { %555 = vst [vmem:[#allocation3 + $0x68] sm:$0xf0] %v544_v29 }
  0xd1   :  { %364 = vrot.lane.b32.xlu0 %v358_v42, %s1758_s27 }
  0xd2   :  { %v683_v12 = vpop.permute.xlu1 %682  ;;  %v610_v63 = vpop.permute.xlu0 %609 }
  0xd3   :  { %v620_v6 = vsel %vm135_vm4, %v608_v22, %v610_v63 }
  0xd4   :  { %632 = vst [vmem:[#allocation3 + $0x98] sm:$0xf0] %v620_v6 }
  0xd5   :  { %617 = vrot.lane.b32.xlu0 %v2230_v39, %s1751_s14 }
  0xd6   :  { %v758_v50 = vpop.permute.xlu1 %757  ;;  %v532_v53 = vpop.permute.xlu0 %531 }
  0xd7   :  { %v543_v54 = vsel %vm101_vm3, %v532_v53, %v534_v35 }
  0xd8   :  { %554 = vst [vmem:[#allocation3 + $0x60] sm:$0xf0] %v543_v54 }
  0xd9   :  { %688 = vrot.lane.b32.xlu0 %v1842_v17, %s1752_s16 }
  0xda   :  { %v833_v7 = vpop.permute.xlu1 %832  ;;  %v606_v15 = vpop.permute.xlu0 %605 }
  0xdb   :  { %v619_v38 = vsel %vm135_vm4, %v606_v15, %v608_v22 }
  0xdc   :  { %631 = vst [vmem:[#allocation3 + $0x90] sm:$0xf0] %v619_v38 }
  0xdd   :  { %763 = vrot.lane.b32.xlu0 %v1842_v17, %s1753_s18 }
  0xde   :  { %v908_v19 = vpop.permute.xlu1 %907  ;;  %v685_v59 = vpop.permute.xlu0 %684 }
  0xdf   :  { %v695_v21 = vsel %vm170_vm5, %v683_v12, %v685_v59 }
  0xe0   :  { %707 = vst [vmem:[#allocation3 + $0xc8] sm:$0xf0] %v695_v21 }
  0xe1   :  { %541 = vrot.lane.b32.xlu0 %v1824_v4, %s1750_s12 }
  0xe2   :  { %v471_v55 = vpop.permute.xlu1 %470  ;;  %v760_v49 = vpop.permute.xlu0 %759 }
  0xe3   :  { %v478_v1 = vsel %vm72_vm2, %v469_v37, %v471_v55  ;;  %v770_v46 = vsel %vm205_vm6, %v758_v50, %v760_v49 }
  0xe4   :  { %489 = vst [vmem:[#allocation3 + $0x40] sm:$0xf0] %v478_v1  ;;  %782 = vst [vmem:[#allocation3 + $0xf8] sm:$0xf0] %v770_v46 }
  0xe5   :  { %692 = vrot.lane.b32.xlu0 %v2230_v39, %s1752_s16 }
  0xe6   :  { %v538_v24 = vpop.permute.xlu1 %537  ;;  %v681_v23 = vpop.permute.xlu0 %680 }
  0xe7   :  { %v545_v51 = vsel %vm101_vm3, %v536_v41, %v538_v24  ;;  %v694_v62 = vsel %vm170_vm5, %v681_v23, %v683_v12 }
  0xe8   :  { %556 = vst [vmem:[#allocation3 + $0x70] sm:$0xf0] %v545_v51  ;;  %706 = vst [vmem:[#allocation3 + $0xc0] sm:$0xf0] %v694_v62 }
  0xe9   :  { %767 = vrot.lane.b32.xlu0 %v2230_v39, %s1753_s18 }
  0xea   :  { %v612_v5 = vpop.permute.xlu1 %611  ;;  %v756_v16 = vpop.permute.xlu0 %755 }
  0xeb   :  { %v621_v26 = vsel %vm135_vm4, %v610_v63, %v612_v5  ;;  %v769_v43 = vsel %vm205_vm6, %v756_v16, %v758_v50 }
  0xec   :  { %633 = vst [vmem:[#allocation3 + $0xa0] sm:$0xf0] %v621_v26  ;;  %781 = vst [vmem:[#allocation3 + $0xf0] sm:$0xf0] %v769_v43 }
  0xed   :  { %838 = vrot.lane.b32.xlu0 %v1842_v17, %s1754_s20 }
  0xee   :  { %v983_v3 = vpop.permute.xlu1 %982  ;;  %v835_v8 = vpop.permute.xlu0 %834 }
  0xef   :  { %v845_v10 = vsel %vm240_vm7, %v833_v7, %v835_v8 }
  0xf0   :  { %857 = vst [vmem:[#allocation3 + $0x128] sm:$0xf0] %v845_v10 }
  0xf1   :  { %913 = vrot.lane.b32.xlu0 %v1842_v17, %s1755_s21 }
  0xf2   :  { %v2259_v18 = vpop.permute.xlu1 %615  ;;  %v910_v31 = vpop.permute.xlu0 %909 }
  0xf3   :  { %v920_v2 = vsel %vm275_vm8, %v908_v19, %v910_v31 }
  0xf4   :  { %932 = vst [vmem:[#allocation3 + $0x158] sm:$0xf0] %v920_v2 }
  0xf5   :  { %842 = vrot.lane.b32.xlu0 %v2230_v39, %s1754_s20 }
  0xf6   :  { %v2264_v14 = vpop.permute.xlu1 %686  ;;  %v831_v45 = vpop.permute.xlu0 %830 }
  0xf7   :  { %v696_v0 = vsel %vm170_vm5, %v685_v59, %v2264_v14  ;;  %v844_v37 = vsel %vm240_vm7, %v831_v45, %v833_v7 }
  0xf8   :  { %708 = vst [vmem:[#allocation3 + $0xd0] sm:$0xf0] %v696_v0  ;;  %856 = vst [vmem:[#allocation3 + $0x120] sm:$0xf0] %v844_v37 }
  0xf9   :  { %917 = vrot.lane.b32.xlu0 %v2230_v39, %s1755_s21 }
  0xfa   :  { %v2271_v28 = vpop.permute.xlu1 %761  ;;  %v906_v25 = vpop.permute.xlu0 %905 }
  0xfb   :  { %v771_v56 = vsel %vm205_vm6, %v760_v49, %v2271_v28  ;;  %v919_v44 = vsel %vm275_vm8, %v906_v25, %v908_v19 }
  0xfc   :  { %783 = vst [vmem:[#allocation3 + $0x100] sm:$0xf0] %v771_v56  ;;  %931 = vst [vmem:[#allocation3 + $0x150] sm:$0xf0] %v919_v44 }
  0xfd   :  { %988 = vrot.lane.b32.xlu0 %v1842_v17, %s1756_s22 }
  0xfe   :  { %v2278_v27 = vpop.permute.xlu1 %690  ;;  %v473_v40 = vpop.permute.xlu0 %472 }
  0xff   :  { %v479_v13 = vsel %vm72_vm2, %v471_v55, %v473_v40 }
 0x100   :  { %490 = vst [vmem:[#allocation3 + $0x48] sm:$0xf0] %v479_v13 }
 0x102   :  { %v2281_v48 = vpop.permute.xlu1 %765  ;;  %v2283_v35 = vpop.permute.xlu0 %539 }
 0x103   :  { %v546_v30 = vsel %vm101_vm3, %v538_v24, %v2283_v35 }
 0x104   :  { %557 = vst [vmem:[#allocation3 + $0x78] sm:$0xf0] %v546_v30 }
 0x106   :  { %v2287_v52 = vpop.permute.xlu1 %836  ;;  %v614_v36 = vpop.permute.xlu0 %613 }
 0x107   :  { %v846_v17 = vsel %vm240_vm7, %v835_v8, %v2287_v52  ;;  %v622_v58 = vsel %vm135_vm4, %v612_v5, %v614_v36  ;;  %v623_v60 = vsel %vm135_vm4, %v614_v36, %v2259_v18 }
 0x108   :  { %858 = vst [vmem:[#allocation3 + $0x130] sm:$0xf0] %v846_v17  ;;  %634 = vst [vmem:[#allocation3 + $0xa8] sm:$0xf0] %v622_v58 }
 0x109   :  { %635 = vst [vmem:[#allocation3 + $0xb0] sm:$0xf0] %v623_v60 }
 0x10a   :  { %v2294_v22 = vpop.permute.xlu1 %911  ;;  %v985_v41 = vpop.permute.xlu0 %984 }
 0x10b   :  { %v921_v42 = vsel %vm275_vm8, %v910_v31, %v2294_v22  ;;  %v995_v29 = vsel %vm310_vm9, %v983_v3, %v985_v41 }
 0x10c   :  { %933 = vst [vmem:[#allocation3 + $0x160] sm:$0xf0] %v921_v42  ;;  %1007 = vst [vmem:[#allocation3 + $0x188] sm:$0xf0] %v995_v29 }
 0x10e   :  { %v2299_v12 = vpop.permute.xlu1 %840  ;;  %v475_v63 = vpop.permute.xlu0 %474 }
 0x10f   :  { %v480_v6 = vsel %vm72_vm2, %v473_v40, %v475_v63  ;;  %492 = vst.msk [vmem:[#allocation3 + $0x58] sm:$0xf0] %vm424_vm0, %v475_v63 }
 0x110   :  { %491 = vst [vmem:[#allocation3 + $0x50] sm:$0xf0] %v480_v6 }
 0x112   :  { %v2303_v50 = vpop.permute.xlu1 %915  ;;  %v981_v53 = vpop.permute.xlu0 %980 }
 0x113   :  { %v994_v54 = vsel %vm310_vm9, %v981_v53, %v983_v3 }
 0x114   :  { %1006 = vst [vmem:[#allocation3 + $0x180] sm:$0xf0] %v994_v54 }
 0x116   :  { %v2306_v7 = vpop.permute.xlu1 %986 }
 0x117   :  { %v996_v15 = vsel %vm310_vm9, %v985_v41, %v2306_v7 }
 0x118   :  { %1008 = vst [vmem:[#allocation3 + $0x190] sm:$0xf0] %v996_v15 }
 0x131   :  { %v367_v38 = vpop.permute.xlu1 %366 }
 0x132   :  { %v371_v59 = vrot.slane %v367_v38, 4 }
 0x13f   :  { %v369_v19 = vpop.permute.xlu0 %368 }
 0x140   :  { %v372_v21 = vrot.slane %v369_v19, 4 }
 0x142   :  { %v377_v55 = vsel %vm70_vm1, %v371_v59, %v372_v21  ;;  %390 = vst.msk [vmem:[#allocation2 + $0x18] sm:$0xf] %vm389_vm11, %v372_v21  ;;  %vm1098_vm11 = vcmask 588800  }
 0x143   :  { %v2312_v49 = vsel %vm373_vm12, %v377_v55, %v369_v19  ;;  %v365_v1 = vpop.permute.xlu0 %364 }
 0x144   :  { %v2316_v46 = vcombine.high %v2312_v49, %v2312_v49  ;;  %407 = vst [vmem:[#allocation3 + $0x20] sm:$0xf] %v2312_v49  ;;  %v370_v24 = vrot.slane %v365_v1, 4 }
 0x146   :  { %v374_v23 = vsel %vm373_vm12, %v370_v24, %v365_v1  ;;  %v375_v51 = vsel %vm70_vm1, %v370_v24, %v371_v59  ;;  %409 = vst.msk [vmem:[#allocation3 + $0x28] sm:$0xf] %vm408_vm15, %v2316_v46 }
 0x147   :  { %v2324_v62 = vsel %vm373_vm12, %v375_v51, %v367_v38  ;;  %386 = vst.msk [vmem:[#allocation2] sm:$0xff] %vm385_vm10, %v374_v23  ;;  %v618_v5 = vpop.permute.xlu0 %617 }
 0x148   :  { %v624_v16 = vsel %vm135_vm4, %v2259_v18, %v618_v5  ;;  %v2330_v26 = vcombine.high %v2324_v62, %v2324_v62  ;;  %405 = vst [vmem:[#allocation3 + $0x10] sm:$0xf] %v2324_v62 }
 0x149   :  { %636 = vst.msk [vmem:[#allocation3 + $0xb8] sm:$0xf0] %vm424_vm0, %v624_v16  ;;  %v563_v43 = vld [vmem:[#allocation2 + $0x18] sm:$0xf] }
 0x14a   :  { %583 = vrot.lane.b32.xlu0 %v563_v43, %s1751_s14  ;;  %406 = vst [vmem:[#allocation3 + $0x18] sm:$0xf] %v2330_v26  ;;  %v640_v18 = vld [vmem:[#allocation2 + $0x18] sm:$0xf] }
 0x14b   :  { %v689_v3 = vpop.permute.xlu0 %688  ;;  %v715_v37 = vld [vmem:[#allocation2 + $0x18] sm:$0xf] }
 0x14c   :  { %v697_v8 = vsel %vm170_vm5, %v2264_v14, %v689_v3  ;;  %v698_v10 = vsel %vm170_vm5, %v689_v3, %v2278_v27  ;;  %v865_v13 = vld [vmem:[#allocation2 + $0x18] sm:$0xf] }
 0x14d   :  { %709 = vst [vmem:[#allocation3 + $0xd8] sm:$0xf0] %v697_v8  ;;  %710 = vst [vmem:[#allocation3 + $0xe0] sm:$0xf0] %v698_v10  ;;  %v940_v63 = vld [vmem:[#allocation2 + $0x18] sm:$0xf] }
 0x14e   :  { %660 = vrot.lane.b32.xlu0 %v640_v18, %s1752_s16  ;;  %v426_v31 = vld [vmem:[#allocation2] sm:$0xff] }
 0x14f   :  { %435 = vrot.lane.b32.xlu1 %v426_v31, %s1749_s10  ;;  %v2342_v2 = vcombine.high %v426_v31, %v426_v31  ;;  %v764_v45 = vpop.permute.xlu0 %763  ;;  %403 = vst [vmem:[#allocation3] sm:$0xf] %v426_v31 }
 0x150   :  { %v772_v0 = vsel %vm205_vm6, %v2271_v28, %v764_v45  ;;  %v773_v14 = vsel %vm205_vm6, %v764_v45, %v2281_v48  ;;  %v790_v28 = vld [vmem:[#allocation2 + $0x18] sm:$0xf] }
 0x151   :  { %784 = vst [vmem:[#allocation3 + $0x108] sm:$0xf0] %v772_v0  ;;  %785 = vst [vmem:[#allocation3 + $0x110] sm:$0xf0] %v773_v14 }
 0x152   :  { %404 = vst [vmem:[#allocation3 + $0x8] sm:$0xf] %v2342_v2  ;;  %735 = vrot.lane.b32.xlu0 %v715_v37, %s1753_s18 }
 0x153   :  { %502 = vrot.lane.b32.xlu1 %v426_v31, %s1750_s12  ;;  %v542_v25 = vpop.permute.xlu0 %541 }
 0x154   :  { %v547_v56 = vsel %vm101_vm3, %v2283_v35, %v542_v25  ;;  %559 = vst.msk [vmem:[#allocation3 + $0x88] sm:$0xf0] %vm424_vm0, %v542_v25 }
 0x155   :  { %558 = vst [vmem:[#allocation3 + $0x80] sm:$0xf0] %v547_v56 }
 0x156   :  { %810 = vrot.lane.b32.xlu0 %v790_v28, %s1754_s20  ;;  %v1016_v18 = vld [vmem:[#allocation3] sm:$0xff] }
 0x157   :  { %571 = vrot.lane.b32.xlu1 %v426_v31, %s1751_s14  ;;  %v693_v44 = vpop.permute.xlu0 %692 }
 0x158   :  { %v699_v40 = vsel %vm170_vm5, %v2278_v27, %v693_v44 }
 0x159   :  { %711 = vst.msk [vmem:[#allocation3 + $0xe8] sm:$0xf0] %vm424_vm0, %v699_v40  ;;  %v1017_v45 = vld [vmem:[#allocation3 + $0x8] sm:$0xff] }
 0x15a   :  { %885 = vrot.lane.b32.xlu0 %v865_v13, %s1755_s21 }
 0x15b   :  { %648 = vrot.lane.b32.xlu1 %v426_v31, %s1752_s16  ;;  %v768_v35 = vpop.permute.xlu0 %767 }
 0x15c   :  { %v774_v30 = vsel %vm205_vm6, %v2281_v48, %v768_v35 }
 0x15d   :  { %786 = vst.msk [vmem:[#allocation3 + $0x118] sm:$0xf0] %vm424_vm0, %v774_v30 }
 0x15e   :  { %439 = vrot.lane.b32.xlu0 %v2324_v62, %s1749_s10 }
 0x15f   :  { %723 = vrot.lane.b32.xlu1 %v426_v31, %s1753_s18  ;;  %v839_v36 = vpop.permute.xlu0 %838 }
 0x160   :  { %v847_v27 = vsel %vm240_vm7, %v2287_v52, %v839_v36  ;;  %v848_v17 = vsel %vm240_vm7, %v839_v36, %v2299_v12  ;;  %v1759_v36 = vmov 1966171168  }
 0x161   :  { %859 = vst [vmem:[#allocation3 + $0x138] sm:$0xf0] %v847_v27  ;;  %860 = vst [vmem:[#allocation3 + $0x140] sm:$0xf0] %v848_v17  ;;  %v1077_v27 = vunpack.c.l.s4 %v1759_v36 }
 0x162   :  { %506 = vrot.lane.b32.xlu0 %v2324_v62, %s1750_s12 }
 0x163   :  { %798 = vrot.lane.b32.xlu1 %v426_v31, %s1754_s20  ;;  %v914_v48 = vpop.permute.xlu0 %913 }
 0x164   :  { %v922_v58 = vsel %vm275_vm8, %v2294_v22, %v914_v48  ;;  %v923_v60 = vsel %vm275_vm8, %v914_v48, %v2303_v50 }
 0x165   :  { %934 = vst [vmem:[#allocation3 + $0x168] sm:$0xf0] %v922_v58  ;;  %935 = vst [vmem:[#allocation3 + $0x170] sm:$0xf0] %v923_v60 }
 0x166   :  { %575 = vrot.lane.b32.xlu0 %v2324_v62, %s1751_s14 }
 0x167   :  { %873 = vrot.lane.b32.xlu1 %v426_v31, %s1755_s21  ;;  %v843_v52 = vpop.permute.xlu0 %842 }
 0x168   :  { %v849_v41 = vsel %vm240_vm7, %v2299_v12, %v843_v52 }
 0x169   :  { %861 = vst.msk [vmem:[#allocation3 + $0x148] sm:$0xf0] %vm424_vm0, %v849_v41 }
 0x16a   :  { %652 = vrot.lane.b32.xlu0 %v2324_v62, %s1752_s16 }
 0x16b   :  { %948 = vrot.lane.b32.xlu1 %v426_v31, %s1756_s22  ;;  %v918_v22 = vpop.permute.xlu0 %917 }
 0x16c   :  { %v924_v42 = vsel %vm275_vm8, %v2303_v50, %v918_v22 }
 0x16d   :  { %936 = vst.msk [vmem:[#allocation3 + $0x178] sm:$0xf0] %vm424_vm0, %v924_v42 }
 0x16e   :  { %727 = vrot.lane.b32.xlu0 %v2324_v62, %s1753_s18 }
 0x16f   :  { %437 = vrot.lane.b32.xlu1 %v2342_v2, %s1749_s10  ;;  %v2394_v29 = vpop.permute.xlu0 %988 }
 0x170   :  { %v997_v12 = vsel %vm310_vm9, %v2306_v7, %v2394_v29 }
 0x171   :  { %1009 = vst [vmem:[#allocation3 + $0x198] sm:$0xf0] %v997_v12  ;;  %v1078_v12 = vunpack.c.0.s8 %v1077_v27 }
 0x172   :  { %802 = vrot.lane.b32.xlu0 %v2324_v62, %s1754_s20 }
 0x173   :  { %504 = vrot.lane.b32.xlu1 %v2342_v2, %s1750_s12 }
 0x176   :  { %877 = vrot.lane.b32.xlu0 %v2324_v62, %s1755_s21 }
 0x177   :  { %573 = vrot.lane.b32.xlu1 %v2342_v2, %s1751_s14 }
 0x17a   :  { %443 = vrot.lane.b32.xlu0 %v2312_v49, %s1749_s10 }
 0x17b   :  { %650 = vrot.lane.b32.xlu1 %v2342_v2, %s1752_s16 }
 0x17e   :  { %510 = vrot.lane.b32.xlu0 %v2312_v49, %s1750_s12 }
 0x17f   :  { %725 = vrot.lane.b32.xlu1 %v2342_v2, %s1753_s18 }
 0x182   :  { %579 = vrot.lane.b32.xlu0 %v2312_v49, %s1751_s14 }
 0x183   :  { %800 = vrot.lane.b32.xlu1 %v2342_v2, %s1754_s20 }
 0x186   :  { %952 = vrot.lane.b32.xlu0 %v2324_v62, %s1756_s22 }
 0x187   :  { %875 = vrot.lane.b32.xlu1 %v2342_v2, %s1755_s21 }
 0x18a   :  { %656 = vrot.lane.b32.xlu0 %v2312_v49, %s1752_s16 }
 0x18b   :  { %950 = vrot.lane.b32.xlu1 %v2342_v2, %s1756_s22 }
 0x18e   :  { %731 = vrot.lane.b32.xlu0 %v2312_v49, %s1753_s18 }
 0x18f   :  { %441 = vrot.lane.b32.xlu1 %v2330_v26, %s1749_s10 }
 0x192   :  { %806 = vrot.lane.b32.xlu0 %v2312_v49, %s1754_s20 }
 0x193   :  { %508 = vrot.lane.b32.xlu1 %v2330_v26, %s1750_s12 }
 0x196   :  { %881 = vrot.lane.b32.xlu0 %v2312_v49, %s1755_s21 }
 0x197   :  { %577 = vrot.lane.b32.xlu1 %v2330_v26, %s1751_s14 }
 0x19a   :  { %956 = vrot.lane.b32.xlu0 %v2312_v49, %s1756_s22 }
 0x19b   :  { %445 = vrot.lane.b32.xlu1 %v2316_v46, %s1749_s10 }
 0x19e   :  { %960 = vrot.lane.b32.xlu0 %v940_v63, %s1756_s22 }
 0x19f   :  { %581 = vrot.lane.b32.xlu1 %v2316_v46, %s1751_s14 }
 0x1a2   :  { %992 = vrot.lane.b32.xlu0 %v2230_v39, %s1756_s22 }
 0x1a3   :  { %654 = vrot.lane.b32.xlu1 %v2330_v26, %s1752_s16 }
 0x1a7   :  { %729 = vrot.lane.b32.xlu1 %v2330_v26, %s1753_s18 }
 0x1ab   :  { %512 = vrot.lane.b32.xlu1 %v2316_v46, %s1750_s12 }
 0x1af   :  { %658 = vrot.lane.b32.xlu1 %v2316_v46, %s1752_s16 }
 0x1b3   :  { %733 = vrot.lane.b32.xlu1 %v2316_v46, %s1753_s18 }
 0x1b7   :  { %804 = vrot.lane.b32.xlu1 %v2330_v26, %s1754_s20 }
 0x1bb   :  { %879 = vrot.lane.b32.xlu1 %v2330_v26, %s1755_s21 }
 0x1bc   :  { %v2462_v39 = vpop.permute.xlu0 %583 }
 0x1bf   :  { %808 = vrot.lane.b32.xlu1 %v2316_v46, %s1754_s20 }
 0x1c0   :  { %v2466_v6 = vpop.permute.xlu0 %660 }
 0x1c1   :  { %v436_v50 = vpop.permute.xlu1 %435 }
 0x1c3   :  { %883 = vrot.lane.b32.xlu1 %v2316_v46, %s1755_s21 }
 0x1c4   :  { %v2470_v53 = vpop.permute.xlu0 %735 }
 0x1c5   :  { %v503_v54 = vpop.permute.xlu1 %502 }
 0x1c7   :  { %954 = vrot.lane.b32.xlu1 %v2330_v26, %s1756_s22 }
 0x1c8   :  { %v2474_v7 = vpop.permute.xlu0 %810 }
 0x1c9   :  { %v572_v15 = vpop.permute.xlu1 %571 }
 0x1cb   :  { %958 = vrot.lane.b32.xlu1 %v2316_v46, %s1756_s22 }
 0x1cc   :  { %v2478_v38 = vpop.permute.xlu0 %885 }
 0x1cd   :  { %v649_v19 = vpop.permute.xlu1 %648 }
 0x1cf   :  { %990 = vrot.lane.b32.xlu1 %v1824_v4, %s1756_s22 }
 0x1d0   :  { %v2482_v59 = vpop.permute.xlu0 %439 }
 0x1d1   :  { %v724_v21 = vpop.permute.xlu1 %723 }
 0x1d4   :  { %v2484_v55 = vpop.permute.xlu0 %506 }
 0x1d5   :  { %v799_v49 = vpop.permute.xlu1 %798 }
 0x1d8   :  { %v2486_v1 = vpop.permute.xlu0 %575 }
 0x1d9   :  { %v2488_v24 = vpop.permute.xlu1 %873 }
 0x1dc   :  { %v2490_v23 = vpop.permute.xlu0 %652 }
 0x1dd   :  { %v2492_v51 = vpop.permute.xlu1 %948 }
 0x1e0   :  { %v2494_v46 = vpop.permute.xlu0 %727 }
 0x1e1   :  { %v438_v62 = vpop.permute.xlu1 %437 }
 0x1e2   :  { %v447_v5 = vsel %vm72_vm2, %v436_v50, %v438_v62  ;;  %v448_v4 = vsel %vm72_vm2, %v438_v62, %v2482_v59 }
 0x1e3   :  { %458 = vst [vmem:[#allocation3 + $0x30] sm:$0xf] %v447_v5  ;;  %459 = vst [vmem:[#allocation3 + $0x38] sm:$0xf] %v448_v4  ;;  %v2537_v4 = vsub.s32 %v1078_v12, %v2046_v20 }
 0x1e4   :  { %v2499_v16 = vpop.permute.xlu0 %802 }
 0x1e5   :  { %v505_v26 = vpop.permute.xlu1 %504 }
 0x1e6   :  { %v514_v43 = vsel %vm101_vm3, %v503_v54, %v505_v26  ;;  %v515_v3 = vsel %vm101_vm3, %v505_v26, %v2484_v55 }
 0x1e7   :  { %525 = vst [vmem:[#allocation3 + $0x60] sm:$0xf] %v514_v43  ;;  %526 = vst [vmem:[#allocation3 + $0x68] sm:$0xf] %v515_v3 }
 0x1e8   :  { %v2504_v8 = vpop.permute.xlu0 %877 }
 0x1e9   :  { %v574_v10 = vpop.permute.xlu1 %573 }
 0x1ea   :  { %v585_v31 = vsel %vm135_vm4, %v572_v15, %v574_v10  ;;  %v586_v2 = vsel %vm135_vm4, %v574_v10, %v2486_v1  ;;  %v1023_v0 = vld [vmem:[#allocation3 + $0x38] sm:$0xff]  ;;  %v1022_v14 = vld [vmem:[#allocation3 + $0x30] sm:$0xff]  ;;  %v1012_v15 = vld [vmem:[%s2734_s3] sm:$0x1] }
 0x1eb   :  { %597 = vst [vmem:[#allocation3 + $0x90] sm:$0xf] %v585_v31  ;;  %598 = vst [vmem:[#allocation3 + $0x98] sm:$0xf] %v586_v2  ;;  %v1664_v37 = vpack.c.bf16 %v1023_v0, %v1017_v45  ;;  %v1666_v25 = vpack.c.bf16 %v1022_v14, %v1016_v18 }
 0x1ec   :  { %v2509_v56 = vpop.permute.xlu0 %443 }
 0x1ed   :  { %v651_v28 = vpop.permute.xlu1 %650  ;;  %1665 = vmatprep.subr.bf16.mxu0 %v1664_v37 }
 0x1ee   :  { %v662_v44 = vsel %vm170_vm5, %v649_v19, %v651_v28  ;;  %v663_v40 = vsel %vm170_vm5, %v651_v28, %v2490_v23  ;;  %1667 = vmatpush1.bf16.msra.mxu0 %v1666_v25  ;;  %v1029_v30 = vld [vmem:[#allocation3 + $0x68] sm:$0xff]  ;;  %v1028_v60 = vld [vmem:[#allocation3 + $0x60] sm:$0xff] }
 0x1ef   :  { %674 = vst [vmem:[#allocation3 + $0xc0] sm:$0xf] %v662_v44  ;;  %675 = vst [vmem:[#allocation3 + $0xc8] sm:$0xf] %v663_v40  ;;  %v1013_v19 = vld [vmem:[%s2734_s3 + $0x1] sm:$0x1] }
 0x1f0   :  { %v2514_v13 = vpop.permute.xlu0 %510  ;;  %v1074_v45 = vcombine.low %v1012_v15, %v1013_v19  ;;  %v1019_v19 = vld [vmem:[#allocation3 + $0x18] sm:$0xff] }
 0x1f1   :  { %v726_v35 = vpop.permute.xlu1 %725 }
 0x1f2   :  { %v737_v17 = vsel %vm205_vm6, %v724_v21, %v726_v35  ;;  %v738_v48 = vsel %vm205_vm6, %v726_v35, %v2494_v46  ;;  %v1035_v58 = vld [vmem:[#allocation3 + $0x98] sm:$0xff]  ;;  %v1034_v52 = vld [vmem:[#allocation3 + $0x90] sm:$0xff]  ;;  %v1014_v21 = vld [vmem:[%s2734_s3 + $0x2] sm:$0x1]  ;;  %v1082_v28 = vrot.slane %v1074_v45, %v2537_v4 }
 0x1f3   :  { %749 = vst [vmem:[#allocation3 + $0xf0] sm:$0xf] %v737_v17  ;;  %750 = vst [vmem:[#allocation3 + $0xf8] sm:$0xf] %v738_v48  ;;  %v1668_v41 = vpack.c.bf16 %v1035_v58, %v1029_v30  ;;  %v1670_v22 = vpack.c.bf16 %v1034_v52, %v1028_v60 }
 0x1f4   :  { %v2522_v54 = vpop.permute.xlu0 %579 }
 0x1f5   :  { %v801_v42 = vpop.permute.xlu1 %800  ;;  %1669 = vmatprep.subr.bf16.mxu0 %v1668_v41 }
 0x1f6   :  { %v812_v63 = vsel %vm240_vm7, %v799_v49, %v801_v42  ;;  %v813_v50 = vsel %vm240_vm7, %v801_v42, %v2499_v16  ;;  %1671 = vmatpush1.bf16.msra.mxu0 %v1670_v22  ;;  %v1015_v49 = vld [vmem:[%s2734_s3 + $0x3] sm:$0x1]  ;;  %v1041_v5 = vld [vmem:[#allocation3 + $0xc8] sm:$0xff] }
 0x1f7   :  { %824 = vst [vmem:[#allocation3 + $0x120] sm:$0xf] %v812_v63  ;;  %825 = vst [vmem:[#allocation3 + $0x128] sm:$0xf] %v813_v50  ;;  %v1040_v10 = vld [vmem:[#allocation3 + $0xc0] sm:$0xff]  ;;  %v1075_v0 = vcombine.low %v1014_v21, %v1015_v49  ;;  %v1018_v50 = vld [vmem:[#allocation3 + $0x10] sm:$0xff] }
 0x1f8   :  { %v2543_v14 = vpop.permute.xlu0 %952 }
 0x1f9   :  { %v876_v62 = vpop.permute.xlu1 %875  ;;  %v1089_v44 = vrot.slane %v1075_v0, %v2537_v4 }
 0x1fa   :  { %v887_v26 = vsel %vm275_vm8, %v2488_v24, %v876_v62  ;;  %v888_v43 = vsel %vm275_vm8, %v876_v62, %v2504_v8  ;;  %v1047_v3 = vld [vmem:[#allocation3 + $0xf8] sm:$0xff]  ;;  %v1046_v18 = vld [vmem:[#allocation3 + $0xf0] sm:$0xff] }
 0x1fb   :  { %899 = vst [vmem:[#allocation3 + $0x150] sm:$0xf] %v887_v26  ;;  %900 = vst [vmem:[#allocation3 + $0x158] sm:$0xf] %v888_v43  ;;  %v1672_v31 = vpack.c.bf16 %v1047_v3, %v1041_v5  ;;  %v1674_v2 = vpack.c.bf16 %v1046_v18, %v1040_v10  ;;  %v1090_v60 = vcombine.low %v1082_v28, %v1089_v44  ;;  %v1020_v44 = vld [vmem:[#allocation3 + $0x20] sm:$0xff] }
 0x1fc   :  { %v657_v45 = vpop.permute.xlu0 %656 }
 0x1fd   :  { %v951_v37 = vpop.permute.xlu1 %950  ;;  %1673 = vmatprep.subr.bf16.mxu0 %v1672_v31  ;;  %v2560_v42 = vrot.slane %v1090_v60, %v2537_v4 }
 0x1fe   :  { %v962_v25 = vsel %vm310_vm9, %v2492_v51, %v951_v37  ;;  %v963_v24 = vsel %vm310_vm9, %v951_v37, %v2543_v14  ;;  %1675 = vmatpush1.bf16.msra.mxu0 %v1674_v2  ;;  %v1053_v35 = vld [vmem:[#allocation3 + $0x128] sm:$0xff]  ;;  %v1052_v51 = vld [vmem:[#allocation3 + $0x120] sm:$0xff] }
 0x1ff   :  { %974 = vst [vmem:[#allocation3 + $0x180] sm:$0xf] %v962_v25  ;;  %975 = vst [vmem:[#allocation3 + $0x188] sm:$0xf] %v963_v24  ;;  %v1021_v25 = vld [vmem:[#allocation3 + $0x28] sm:$0xff] }
 0x201   :  { %v442_v40 = vpop.permute.xlu1 %441 }
 0x202   :  { %v449_v30 = vsel %vm72_vm2, %v2482_v59, %v442_v40  ;;  %v450_v36 = vsel %vm72_vm2, %v442_v40, %v2509_v56  ;;  %v1059_v27 = vld [vmem:[#allocation3 + $0x158] sm:$0xff]  ;;  %v1058_v17 = vld [vmem:[#allocation3 + $0x150] sm:$0xff] }
 0x203   :  { %460 = vst [vmem:[#allocation3 + $0x40] sm:$0xf] %v449_v30  ;;  %461 = vst [vmem:[#allocation3 + $0x48] sm:$0xf] %v450_v36  ;;  %v1676_v48 = vpack.c.bf16 %v1059_v27, %v1053_v35  ;;  %v1678_v58 = vpack.c.bf16 %v1058_v17, %v1052_v51  ;;  %v732_v30 = vpop.permute.xlu0 %731 }
 0x205   :  { %v509_v52 = vpop.permute.xlu1 %508  ;;  %1677 = vmatprep.subr.bf16.mxu0 %v1676_v48 }
 0x206   :  { %v516_v41 = vsel %vm101_vm3, %v2484_v55, %v509_v52  ;;  %v517_v22 = vsel %vm101_vm3, %v509_v52, %v2514_v13  ;;  %1679 = vmatpush1.bf16.msra.mxu0 %v1678_v58  ;;  %v1065_v59 = vld [vmem:[#allocation3 + $0x188] sm:$0xff]  ;;  %v1064_v63 = vld [vmem:[#allocation3 + $0x180] sm:$0xff] }
 0x207   :  { %527 = vst [vmem:[#allocation3 + $0x70] sm:$0xf] %v516_v41  ;;  %528 = vst [vmem:[#allocation3 + $0x78] sm:$0xf] %v517_v22  ;;  %1117 = vmatprep.subr.mxu0 %v1065_v59 }
 0x209   :  { %v578_v12 = vpop.permute.xlu1 %577 }
 0x20a   :  { %v587_v15 = vsel %vm135_vm4, %v2486_v1, %v578_v12  ;;  %v588_v55 = vsel %vm135_vm4, %v578_v12, %v2522_v54  ;;  %1118 = vmatpush1.msra.mxu0 %v1064_v63  ;;  %v1025_v21 = vld [vmem:[#allocation3 + $0x48] sm:$0xff]  ;;  %v1024_v49 = vld [vmem:[#allocation3 + $0x40] sm:$0xff] }
 0x20b   :  { %599 = vst [vmem:[#allocation3 + $0xa0] sm:$0xf] %v587_v15  ;;  %600 = vst [vmem:[#allocation3 + $0xa8] sm:$0xf] %v588_v55  ;;  %v1680_v62 = vpack.c.bf16 %v1025_v21, %v1019_v19  ;;  %v1682_v5 = vpack.c.bf16 %v1024_v49, %v1018_v50  ;;  %1661 = vmatmul.mubr.msk.f32.vlgmr.msra.gmra.mrb[0].mxu0 %vm1098_vm11, %v2560_v42  ;;  %v807_v49 = vpop.permute.xlu0 %806 }
 0x20c   :  { %1307 = vmatprep.mubr.f32.mxu0 %v1757_v61 }
 0x20d   :  { %v446_v26 = vpop.permute.xlu1 %445  ;;  %1681 = vmatprep.subr.bf16.mxu1 %v1680_v62 }
 0x20e   :  { %v451_v1 = vsel %vm72_vm2, %v2509_v56, %v446_v26  ;;  %463 = vst.msk [vmem:[#allocation3 + $0x58] sm:$0xf] %vm408_vm15, %v446_v26  ;;  %1683 = vmatpush1.bf16.msra.mxu1 %v1682_v5  ;;  %v1031_v3 = vld [vmem:[#allocation3 + $0x78] sm:$0xff]  ;;  %v1030_v2 = vld [vmem:[#allocation3 + $0x70] sm:$0xff] }
 0x20f   :  { %462 = vst [vmem:[#allocation3 + $0x50] sm:$0xf] %v451_v1 }
 0x211   :  { %v582_v43 = vpop.permute.xlu1 %581 }
 0x212   :  { %v589_v10 = vsel %vm135_vm4, %v2522_v54, %v582_v43  ;;  %v590_v18 = vsel %vm135_vm4, %v582_v43, %v2462_v39  ;;  %v1037_v31 = vld [vmem:[#allocation3 + $0xa8] sm:$0xff]  ;;  %v1036_v61 = vld [vmem:[#allocation3 + $0xa0] sm:$0xff] }
 0x213   :  { %601 = vst [vmem:[#allocation3 + $0xb0] sm:$0xf] %v589_v10  ;;  %602 = vst.msk [vmem:[#allocation3 + $0xb8] sm:$0xf] %vm408_vm15, %v590_v18  ;;  %v1684_v56 = vpack.c.bf16 %v1037_v31, %v1031_v3  ;;  %v1686_v0 = vpack.c.bf16 %v1036_v61, %v1030_v2 }
 0x215   :  { %v655_v37 = vpop.permute.xlu1 %654  ;;  %1685 = vmatprep.subr.bf16.mxu1 %v1684_v56  ;;  %v1027_v24 = vld [vmem:[#allocation3 + $0x58] sm:$0xff] }
 0x216   :  { %v664_v28 = vsel %vm170_vm5, %v2490_v23, %v655_v37  ;;  %v665_v54 = vsel %vm170_vm5, %v655_v37, %v657_v45  ;;  %1687 = vmatpush1.bf16.msra.mxu1 %v1686_v0  ;;  %v1696_v39 = vpack.c.bf16 %v1027_v24, %v1021_v25  ;;  %v1026_v40 = vld [vmem:[#allocation3 + $0x50] sm:$0xff] }
 0x217   :  { %676 = vst [vmem:[#allocation3 + $0xd0] sm:$0xf] %v664_v28  ;;  %677 = vst [vmem:[#allocation3 + $0xd8] sm:$0xf] %v665_v54  ;;  %v1698_v35 = vpack.c.bf16 %v1026_v40, %v1020_v44 }
 0x218   :  { %1697 = vmatprep.subr.bf16.mxu0 %v1696_v39 }
 0x219   :  { %v730_v36 = vpop.permute.xlu1 %729  ;;  %1699 = vmatpush1.bf16.msra.mxu0 %v1698_v35 }
 0x21a   :  { %v739_v27 = vsel %vm205_vm6, %v2494_v46, %v730_v36  ;;  %v740_v51 = vsel %vm205_vm6, %v730_v36, %v732_v30  ;;  %v1039_v50 = vld [vmem:[#allocation3 + $0xb8] sm:$0xff]  ;;  %v1038_v21 = vld [vmem:[#allocation3 + $0xb0] sm:$0xff] }
 0x21b   :  { %751 = vst [vmem:[#allocation3 + $0x100] sm:$0xf] %v739_v27  ;;  %752 = vst [vmem:[#allocation3 + $0x108] sm:$0xf] %v740_v51 }
 0x21d   :  { %v513_v23 = vpop.permute.xlu1 %512 }
 0x21e   :  { %v518_v17 = vsel %vm101_vm3, %v2514_v13, %v513_v23  ;;  %530 = vst.msk [vmem:[#allocation3 + $0x88] sm:$0xf] %vm408_vm15, %v513_v23  ;;  %v1043_v58 = vld [vmem:[#allocation3 + $0xd8] sm:$0xff]  ;;  %v1042_v46 = vld [vmem:[#allocation3 + $0xd0] sm:$0xff] }
 0x21f   :  { %529 = vst [vmem:[#allocation3 + $0x80] sm:$0xf] %v518_v17 }
 0x221   :  { %v659_v48 = vpop.permute.xlu1 %658 }
 0x222   :  { %v666_v60 = vsel %vm170_vm5, %v657_v45, %v659_v48  ;;  %v667_v52 = vsel %vm170_vm5, %v659_v48, %v2466_v6  ;;  %v1049_v41 = vld [vmem:[#allocation3 + $0x108] sm:$0xff]  ;;  %v1048_v22 = vld [vmem:[#allocation3 + $0x100] sm:$0xff] }
 0x223   :  { %678 = vst [vmem:[#allocation3 + $0xe0] sm:$0xf] %v666_v60  ;;  %679 = vst.msk [vmem:[#allocation3 + $0xe8] sm:$0xf] %vm408_vm15, %v667_v52  ;;  %v1688_v59 = vpack.c.bf16 %v1049_v41, %v1043_v58  ;;  %v1690_v12 = vpack.c.bf16 %v1048_v22, %v1042_v46 }
 0x225   :  { %v734_v63 = vpop.permute.xlu1 %733  ;;  %1689 = vmatprep.subr.bf16.mxu1 %v1688_v59  ;;  %v1033_v13 = vld [vmem:[#allocation3 + $0x88] sm:$0xff] }
 0x226   :  { %v741_v15 = vsel %vm205_vm6, %v732_v30, %v734_v63  ;;  %v742_v55 = vsel %vm205_vm6, %v734_v63, %v2470_v53  ;;  %1691 = vmatpush1.bf16.msra.mxu1 %v1690_v12  ;;  %v1700_v19 = vpack.c.bf16 %v1039_v50, %v1033_v13  ;;  %v1032_v6 = vld [vmem:[#allocation3 + $0x80] sm:$0xff]  ;;  %v882_v53 = vpop.permute.xlu0 %881 }
 0x227   :  { %753 = vst [vmem:[#allocation3 + $0x110] sm:$0xf] %v741_v15  ;;  %754 = vst.msk [vmem:[#allocation3 + $0x118] sm:$0xf] %vm408_vm15, %v742_v55  ;;  %v1702_v62 = vpack.c.bf16 %v1038_v21, %v1032_v6  ;;  %v1314_v55 = vld [vmem:[%s2733_s2] sm:$0x3f] }
 0x228   :  { %1701 = vmatprep.subr.bf16.mxu0 %v1700_v19  ;;  %v1319_v19 = vrot.slane %v1314_v55, %v2125_v57  ;;  %v1323_v6 = vrot.slane %v1314_v55, %v334_v32 }
 0x229   :  { %v805_v5 = vpop.permute.xlu1 %804  ;;  %1703 = vmatpush1.bf16.msra.mxu0 %v1702_v62 }
 0x22a   :  { %v814_v26 = vsel %vm240_vm7, %v2499_v16, %v805_v5  ;;  %v815_v1 = vsel %vm240_vm7, %v805_v5, %v807_v49  ;;  %v1045_v3 = vld [vmem:[#allocation3 + $0xe8] sm:$0xff]  ;;  %v1044_v2 = vld [vmem:[#allocation3 + $0xe0] sm:$0xff] }
 0x22b   :  { %826 = vst [vmem:[#allocation3 + $0x130] sm:$0xf] %v814_v26  ;;  %827 = vst [vmem:[#allocation3 + $0x138] sm:$0xf] %v815_v1 }
 0x22d   :  { %v880_v43 = vpop.permute.xlu1 %879 }
 0x22e   :  { %v889_v10 = vsel %vm275_vm8, %v2504_v8, %v880_v43  ;;  %v890_v18 = vsel %vm275_vm8, %v880_v43, %v882_v53  ;;  %v1051_v31 = vld [vmem:[#allocation3 + $0x118] sm:$0xff]  ;;  %v1050_v61 = vld [vmem:[#allocation3 + $0x110] sm:$0xff]  ;;  %v957_v8 = vpop.permute.xlu0 %956 }
 0x22f   :  { %901 = vst [vmem:[#allocation3 + $0x160] sm:$0xf] %v889_v10  ;;  %902 = vst [vmem:[#allocation3 + $0x168] sm:$0xf] %v890_v18  ;;  %v1704_v45 = vpack.c.bf16 %v1051_v31, %v1045_v3  ;;  %v1706_v56 = vpack.c.bf16 %v1050_v61, %v1044_v2  ;;  %v1327_v18 = vrot.slane %v1314_v55, %v338_v33 }
 0x230   :  { %v1331_v31 = vrot.slane %v1314_v55, %v342_v34  ;;  %v1335_v34 = vrot.slane %v1314_v55, %v346_v11 }
 0x231   :  { %v809_v16 = vpop.permute.xlu1 %808  ;;  %1705 = vmatprep.subr.bf16.mxu0 %v1704_v45 }
 0x232   :  { %v816_v0 = vsel %vm240_vm7, %v807_v49, %v809_v16  ;;  %v817_v37 = vsel %vm240_vm7, %v809_v16, %v2474_v7  ;;  %1707 = vmatpush1.bf16.msra.mxu0 %v1706_v56  ;;  %v1055_v24 = vld [vmem:[#allocation3 + $0x138] sm:$0xff]  ;;  %v1054_v44 = vld [vmem:[#allocation3 + $0x130] sm:$0xff]  ;;  %v961_v51 = vpop.permute.xlu0 %960 }
 0x233   :  { %828 = vst [vmem:[#allocation3 + $0x140] sm:$0xf] %v816_v0  ;;  %829 = vst.msk [vmem:[#allocation3 + $0x148] sm:$0xf] %vm408_vm15, %v817_v37 }
 0x235   :  { %v884_v25 = vpop.permute.xlu1 %883 }
 0x236   :  { %v891_v28 = vsel %vm275_vm8, %v882_v53, %v884_v25  ;;  %v892_v54 = vsel %vm275_vm8, %v884_v25, %v2478_v38  ;;  %v1061_v39 = vld [vmem:[#allocation3 + $0x168] sm:$0xff]  ;;  %v1060_v40 = vld [vmem:[#allocation3 + $0x160] sm:$0xff] }
 0x237   :  { %903 = vst [vmem:[#allocation3 + $0x170] sm:$0xf] %v891_v28  ;;  %904 = vst.msk [vmem:[#allocation3 + $0x178] sm:$0xf] %vm408_vm15, %v892_v54  ;;  %v1692_v35 = vpack.c.bf16 %v1061_v39, %v1055_v24  ;;  %v1694_v7 = vpack.c.bf16 %v1060_v40, %v1054_v44  ;;  %v1339_v39 = vrot.slane %v1314_v55, %v350_v47 }
 0x239   :  { %v955_v30 = vpop.permute.xlu1 %954  ;;  %1693 = vmatprep.subr.bf16.mxu1 %v1692_v35 }
 0x23a   :  { %v964_v36 = vsel %vm310_vm9, %v2543_v14, %v955_v30  ;;  %v965_v27 = vsel %vm310_vm9, %v955_v30, %v957_v8  ;;  %1695 = vmatpush1.bf16.msra.mxu1 %v1694_v7  ;;  %v1057_v23 = vld [vmem:[#allocation3 + $0x148] sm:$0xff]  ;;  %v1056_v60 = vld [vmem:[#allocation3 + $0x140] sm:$0xff]  ;;  %v993_v14 = vpop.permute.xlu0 %992 }
 0x23b   :  { %976 = vst [vmem:[#allocation3 + $0x190] sm:$0xf] %v964_v36  ;;  %977 = vst [vmem:[#allocation3 + $0x198] sm:$0xf] %v965_v27 }
 0x23d   :  { %v959_v38 = vpop.permute.xlu1 %958 }
 0x23e   :  { %v966_v17 = vsel %vm310_vm9, %v957_v8, %v959_v38  ;;  %v967_v48 = vsel %vm310_vm9, %v959_v38, %v961_v51  ;;  %v1063_v58 = vld [vmem:[#allocation3 + $0x178] sm:$0xff]  ;;  %v1062_v52 = vld [vmem:[#allocation3 + $0x170] sm:$0xff] }
 0x23f   :  { %978 = vst [vmem:[#allocation3 + $0x1a0] sm:$0xf] %v966_v17  ;;  %979 = vst.msk [vmem:[#allocation3 + $0x1a8] sm:$0xf] %vm408_vm15, %v967_v48  ;;  %v1708_v41 = vpack.c.bf16 %v1063_v58, %v1057_v23  ;;  %v1710_v46 = vpack.c.bf16 %v1062_v52, %v1056_v60  ;;  %v1397_v58 = vld [vmem:[%s2736_s5 + $0x1] sm:$0x1] }
 0x240   :  { %v1398_v60 = vld [vmem:[%s2736_s5 + $0x2] sm:$0x1]  ;;  %v1396_v52 = vld [vmem:[%s2736_s5] sm:$0x1] }
 0x241   :  { %v991_v22 = vpop.permute.xlu1 %990  ;;  %1709 = vmatprep.subr.bf16.mxu0 %v1708_v41  ;;  %v1399_v41 = vld [vmem:[%s2736_s5 + $0x3] sm:$0x1] }
 0x242   :  { %v998_v59 = vsel %vm310_vm9, %v2394_v29, %v991_v22  ;;  %v999_v12 = vsel %vm310_vm9, %v991_v22, %v993_v14  ;;  %1711 = vmatpush1.bf16.msra.mxu0 %v1710_v46  ;;  %v1067_v63 = vld [vmem:[#allocation3 + $0x198] sm:$0xff]  ;;  %v1066_v13 = vld [vmem:[#allocation3 + $0x190] sm:$0xff]  ;;  %v1760_v29 = vmov 0   ;;  %v1392_v14 = vld [vmem:[%s2735_s4] sm:$0x1] }
 0x243   :  { %1010 = vst [vmem:[#allocation3 + $0x1a0] sm:$0xf0] %v998_v59  ;;  %1011 = vst.msk [vmem:[#allocation3 + $0x1a8] sm:$0xf0] %vm424_vm0, %v999_v12  ;;  %1188 = vmatprep.subr.mxu1 %v1067_v63  ;;  %1726 = vset.pattern.permute.xlu1 %v1760_v29  ;;  %v1393_v46 = vld [vmem:[%s2735_s4 + $0x1] sm:$0x1] }
 0x244   :  { %1189 = vmatpush1.msra.mxu1 %v1066_v13  ;;  %1725 = vset.pattern.permute.xlu0 %v1760_v29  ;;  %v1394_v22 = vld [vmem:[%s2735_s4 + $0x2] sm:$0x1]  ;;  %v1395_v59 = vld [vmem:[%s2735_s4 + $0x3] sm:$0x1]  ;;  %vm1642_vm0 = vcmp.lt.s32.totalorder %v328_v9, 758 }
 0x245   :  { %1662 = vmatmul.mubr.msk.f32.vlgmr.msra.gmra.mrb[0].mxu1 %vm1098_vm11, %v2560_v42 }
 0x24a   :  { %v1069_v50 = vld [vmem:[#allocation3 + $0x1a8] sm:$0xff]  ;;  %v1068_v15 = vld [vmem:[#allocation3 + $0x1a0] sm:$0xff] }
 0x24b   :  { %1259 = vmatprep.subr.mxu0 %v1069_v50  ;;  %v1410_v50 = vcombine.low %v1392_v14, %v1393_v46 }
 0x24c   :  { %1260 = vmatpush1.msra.mxu0 %v1068_v15  ;;  %v1411_v15 = vcombine.low %v1394_v22, %v1395_v59 }
 0x24d   :  { %1663 = vmatmul.mubr.msk.f32.vlgmr.msra.gmra.mrb[2].mxu0 %vm1098_vm11, %v2560_v42 }
 0x2de   :  { %v2628_v21 = vpop.f32.mrb[0].mxu0 }
 0x2df   :  { %v1346_v49 = vmul.f32 %v1319_v19, %v2628_v21  ;;  %v2631_v62 = vpop.f32.mrb[1].mxu0 }
 0x2e0   :  { %v1347_v42 = vmul.f32 %v1323_v6, %v2631_v62 }
 0x2e1   :  { %v1353_v5 = vsel %vm70_vm1, %v1346_v49, 0.0  ;;  %v1367_v26 = vmul.f32 %v1346_v49, %v1346_v49 }
 0x2e2   :  { %v1354_v1 = vsel %vm70_vm1, %v1347_v42, 0.0  ;;  %v1368_v53 = vmul.f32 %v1347_v42, %v1347_v42 }
 0x2e3   :  { %v1373_v43 = vsel %vm70_vm1, %v1367_v26, 0.0  ;;  %v1355_v3 = vadd.f32 %v1354_v1, %v1353_v5 }
 0x2e4   :  { %v1374_v10 = vsel %vm70_vm1, %v1368_v53, 0.0 }
 0x2e5   :  { %v1375_v32 = vadd.f32 %v1374_v10, %v1373_v43  ;;  %v1418_v43 = vrot.slane %v1410_v50, %v2537_v4 }
 0x318   :  { %v2642_v2 = vpop.f32.mrb[0].mxu1 }
 0x319   :  { %v1348_v61 = vmul.f32 %v1327_v18, %v2642_v2  ;;  %v2645_v45 = vpop.f32.mrb[1].mxu1 }
 0x31a   :  { %v1349_v56 = vmul.f32 %v1331_v31, %v2645_v45 }
 0x31b   :  { %v1356_v16 = vsel %vm70_vm1, %v1348_v61, 0.0  ;;  %v1369_v0 = vmul.f32 %v1348_v61, %v1348_v61 }
 0x31c   :  { %v1357_v37 = vadd.f32 %v1356_v16, %v1355_v3  ;;  %v1358_v8 = vsel %vm70_vm1, %v1349_v56, 0.0  ;;  %v1370_v25 = vmul.f32 %v1349_v56, %v1349_v56  ;;  %v1425_v3 = vrot.slane %v1411_v15, %v2537_v4 }
 0x31d   :  { %v1376_v33 = vsel %vm70_vm1, %v1369_v0, 0.0 }
 0x31e   :  { %v1377_v24 = vadd.f32 %v1376_v33, %v1375_v32  ;;  %v1359_v28 = vadd.f32 %v1358_v8, %v1357_v37  ;;  %v1378_v54 = vsel %vm70_vm1, %v1370_v25, 0.0  ;;  %v1426_v10 = vcombine.low %v1418_v43, %v1425_v3 }
 0x320   :  { %v1379_v44 = vadd.f32 %v1378_v54, %v1377_v24  ;;  %v2656_v40 = vpop.f32.mrb[2].mxu0 }
 0x321   :  { %v1350_v35 = vmul.f32 %v1335_v34, %v2656_v40  ;;  %v2659_v7 = vpop.f32.mrb[3].mxu0 }
 0x322   :  { %v1351_v30 = vmul.f32 %v1339_v39, %v2659_v7 }
 0x323   :  { %v1360_v36 = vsel %vm70_vm1, %v1350_v35, 0.0  ;;  %v1371_v27 = vmul.f32 %v1350_v35, %v1350_v35 }
 0x324   :  { %v1361_v11 = vadd.f32 %v1360_v36, %v1359_v28  ;;  %v1363_v51 = vsel %vm408_vm15, %v1351_v30, 0.0  ;;  %v1372_v38 = vmul.f32 %v1351_v30, %v1351_v30 }
 0x325   :  { %v1380_v23 = vsel %vm70_vm1, %v1371_v27, 0.0 }
 0x326   :  { %v1364_v20 = vadd.f32 %v1363_v51, %v1361_v11  ;;  %v1382_v47 = vsel %vm408_vm15, %v1372_v38, 0.0  ;;  %v1381_v17 = vadd.f32 %v1380_v23, %v1379_v44 }
 0x328   :  { %1365 = vadd.xlane.f32.xlu1 %v1364_v20  ;;  %v1383_v48 = vadd.f32 %v1382_v47, %v1381_v17 }
 0x32a   :  { %1384 = vadd.xlane.f32.xlu0 %v1383_v48 }
 0x339   :  { %1458 = vperm.xlu1 %1726, %v1397_v58  }
 0x33d   :  { %1467 = vperm.xlu1 %1726, %v1398_v60  }
 0x340   :  { %1449 = vperm.xlu0 %1725, %v1396_v52  }
 0x341   :  { %1476 = vperm.xlu1 %1726, %v1399_v41  }
 0x3b5   :  { %v1366_v12 = vpop.xlane.xlu1 %1365 }
 0x3b6   :  { %v1386_v63 = vmul.f32 0.001953125, %v1366_v12 }
 0x3b7   :  { %v1385_v13 = vpop.xlane.xlu0 %1384 }
 0x3b8   :  { %v1387_v29 = vmul.f32 0.001953125, %v1385_v13  ;;  %v1388_v55 = vmul.f32 %v1386_v63, %v1386_v63  ;;  %v1400_v19 = vsub.f32 %v2628_v21, %v1386_v63  ;;  %v1401_v6 = vsub.f32 %v2631_v62, %v1386_v63 }
 0x3b9   :  { %v1402_v49 = vsub.f32 %v2642_v2, %v1386_v63  ;;  %v1403_v42 = vsub.f32 %v2645_v45, %v1386_v63  ;;  %v1404_v5 = vsub.f32 %v2656_v40, %v1386_v63  ;;  %v1405_v26 = vsub.f32 %v2659_v7, %v1386_v63  ;;  %v1459_v18 = vpop.permute.xlu1 %1458 }
 0x3ba   :  { %v1389_v1 = vsub.f32 %v1387_v29, %v1388_v55  ;;  %v1433_v21 = vrot.slane %v1426_v10, %v2537_v4  ;;  %v1464_v45 = vrot.slane %v1459_v18, %v2125_v57 }
 0x3bc   :  { %v1390_v53 = vadd.f32 1e-05, %v1389_v1 }
 0x3bd   :  { %v1468_v31 = vpop.permute.xlu1 %1467 }
 0x3be   :  { %1732 = vrsqrt.f32 %v1390_v53  ;;  %v1473_v56 = vrot.slane %v1468_v31, %v2125_v57 }
 0x3bf   :  { %v1450_v2 = vpop.permute.xlu0 %1449 }
 0x3c0   :  { %v1455_v16 = vrot.slane %v1450_v2, %v2125_v57 }
 0x3c1   :  { %v1477_v61 = vpop.permute.xlu1 %1476 }
 0x3c2   :  { %v1482_v0 = vrot.slane %v1477_v61, %v2125_v57  ;;  %v1487_v37 = vcombine.low %v1455_v16, %v1464_v45  ;;  %v1488_v34 = vcombine.high %v1455_v16, %v1464_v45 }
 0x3c4   :  { %v1489_v8 = vcombine.low %v1473_v56, %v1482_v0  ;;  %v1497_v25 = vrot.slane %v1487_v37, %v2537_v4  ;;  %v1490_v24 = vcombine.high %v1473_v56, %v1482_v0  ;;  %v1504_v39 = vrot.slane %v1488_v34, %v2537_v4 }
 0x3c6   :  { %v1511_v33 = vrot.slane %v1489_v8, %v2537_v4  ;;  %v1518_v44 = vrot.slane %v1490_v24, %v2537_v4 }
 0x3c8   :  { %v1733_v32 = vpop.eup %1732  ;;  %v1519_v28 = vcombine.low %v1497_v25, %v1511_v33  ;;  %v1520_v54 = vcombine.high %v1497_v25, %v1511_v33  ;;  %v1521_v7 = vcombine.low %v1504_v39, %v1518_v44  ;;  %v1522_v57 = vcombine.high %v1504_v39, %v1518_v44 }
 0x3c9   :  { %v1435_v62 = vmul.f32 %v1733_v32, %v1433_v21 }
 0x3ca   :  { %v1529_v40 = vrot.slane %v1519_v28, %v2537_v4  ;;  %v1543_v35 = vrot.slane %v1520_v54, %v2537_v4  ;;  %v1536_v20 = vrot.slane %v1521_v7, %v2537_v4  ;;  %v1550_v47 = vrot.slane %v1522_v57, %v2537_v4 }
 0x3cb   :  { %1438 = vperm.xlu1 %1726, %v1435_v62  }
 0x3cc   :  { %v1551_v30 = vcombine.high %v1529_v40, %v1529_v40  ;;  %v1552_v36 = vcombine.high %v1543_v35, %v1543_v35 }
 0x44a   :  { %v1439_v27 = vpop.permute.xlu1 %1438 }
 0x44b   :  { %v1441_v11 = vmul.f32 %v1439_v27, %v1400_v19  ;;  %v1442_v51 = vmul.f32 %v1439_v27, %v1401_v6  ;;  %v1443_v38 = vmul.f32 %v1439_v27, %v1402_v49  ;;  %v1444_v23 = vmul.f32 %v1439_v27, %v1403_v42 }
 0x44c   :  { %v1445_v17 = vmul.f32 %v1439_v27, %v1404_v5  ;;  %v1446_v48 = vmul.f32 %v1439_v27, %v1405_v26 }
 0x44d   :  { %v1559_v58 = vadd.f32 %v1529_v40, %v1441_v11  ;;  %v1560_v60 = vadd.f32 %v1543_v35, %v1442_v51  ;;  %v1561_v52 = vadd.f32 %v1551_v30, %v1443_v38  ;;  %v1562_v41 = vadd.f32 %v1552_v36, %v1444_v23 }
 0x44e   :  { %v1563_v14 = vadd.f32 %v1536_v20, %v1445_v17  ;;  %v1564_v46 = vadd.f32 %v1550_v47, %v1446_v48 }
 0x44f   :  { %v1565_v22 = vmax.f32 %v1559_v58, 0.0  ;;  %v1566_v59 = vmax.f32 %v1560_v60, 0.0  ;;  %v1567_v12 = vmax.f32 %v1561_v52, 0.0  ;;  %v1568_v63 = vmax.f32 %v1562_v41, 0.0 }
 0x450   :  { %v1569_v13 = vmax.f32 %v1563_v14, 0.0  ;;  %v1570_v50 = vmax.f32 %v1564_v46, 0.0 }
 0x451   :  { %v1577_v15 = vcombine.low %v1565_v22, %v1566_v59  ;;  %v1578_v29 = vcombine.low %v1567_v12, %v1568_v63 }
 0x452   :  { %v1579_v55 = vcombine.low %v1569_v13, %v1570_v50 }
 0x453   :  { %v1586_v19 = vrot.slane %v1577_v15, %v2537_v4  ;;  %v1593_v6 = vrot.slane %v1578_v29, %v2537_v4 }
 0x454   :  { %v1600_v49 = vrot.slane %v1579_v55, %v2537_v4 }
 0x455   :  { %v1601_v42 = vcombine.low %v1586_v19, %v1593_v6  ;;  %v1602_v5 = vcombine.high %v1586_v19, %v1593_v6 }
 0x456   :  { %v1603_v26 = vcombine.high %v1600_v49, %v1600_v49  ;;  %v1624_v43 = vrot.slane %v1600_v49, %v2537_v4 }
 0x457   :  { %v1610_v1 = vrot.slane %v1601_v42, %v2537_v4  ;;  %v1617_v53 = vrot.slane %v1602_v5, %v2537_v4 }
 0x458   :  { %v1631_v3 = vrot.slane %v1603_v26, %v2537_v4 }
 0x459   :  { %v1632_v10 = vcombine.low %v1610_v1, %v1624_v43  ;;  %v1633_v21 = vcombine.high %v1610_v1, %v1624_v43 }
 0x45a   :  { %v1634_v32 = vcombine.low %v1617_v53, %v1631_v3  ;;  %v1635_v62 = vcombine.high %v1617_v53, %v1631_v3 }
 0x45b   :  { %1644 = vst.msk [vmem:[%s2737_s6] sm:$0x3f] %vm1642_vm0, %v1632_v10  ;;  %1646 = vst.msk [vmem:[%s2737_s6 + $0xc] sm:$0x3f] %vm1642_vm0, %v1633_v21 }
 0x45c   :  { %1645 = vst.msk [vmem:[%s2737_s6 + $0x6] sm:$0x3f] %vm1642_vm0, %v1634_v32  ;;  %1647 = vst.msk [vmem:[%s2737_s6 + $0x12] sm:$0x3f] %vm1642_vm0, %v1635_v62 }
 0x45d   :  { %1652 = vsyncpa [#allocation5], 1 }

</bundles_post_ra>
